<compile_context>
chip_gen: v7x
topology: tpu7x:2x2x1
jax: 0.10.0
libtpu: 0.0.40
codegen_flags: <defaults>
</compile_context>

<pallas_src>
import jax
import jax.numpy as jnp
import numpy as np
from jax import lax
from jax.experimental import pallas as pl
from jax.experimental.pallas import tpu as pltpu


# ------------------------------ Pallas kernel ------------------------------

def _lenet_kernel(x_ref, w1_ref, b1_ref, w2_ref, b2_ref, wfc_ref, bfc_ref,
                  o_ref):
    f32 = jnp.float32

    def even_odd_row_selectors(n_out, n_in):
        # pe[i, 2i] = 1, po[i, 2i+1] = 1 : exact 0/1 row-gather matrices.
        r = lax.broadcasted_iota(jnp.int32, (n_out, n_in), 0)
        c = lax.broadcasted_iota(jnp.int32, (n_out, n_in), 1)
        pe = jnp.where(c == 2 * r, 1.0, 0.0).astype(f32)
        po = jnp.where(c == 2 * r + 1, 1.0, 0.0).astype(f32)
        return pe, po

    def conv_relu_pool(act, w_ref, b_row, kh, h_out):
        # act: [H_in, W_in*Cin] (ref or value, rows sliceable statically)
        # w_ref[wp, dh]: band matrix [W_in*Cin, (W_out//2)*Cout] for the
        #   even (wp=0) / odd (wp=1) output columns (width-pool pre-folded).
        # Returns the ReLU'd 2x2-max-pooled activation [h_out//2, ...].
        pe, po = even_odd_row_selectors(h_out // 2, h_out)
        pooled = None
        for wp in range(2):                      # even / odd output columns
            acc = None
            for dh in range(kh):                 # kernel row
                rows = act[dh:dh + h_out, :]
                t = jnp.dot(rows, w_ref[wp, dh], preferred_element_type=f32)
                acc = t if acc is None else acc + t
            cand = jnp.maximum(jnp.dot(pe, acc, preferred_element_type=f32),
                               jnp.dot(po, acc, preferred_element_type=f32))
            pooled = cand if pooled is None else jnp.maximum(pooled, cand)
        return jnp.maximum(pooled + b_row, 0.0)

    # conv1(1->6) + ReLU + pool : [32, 32] -> [14, 84]   (lane = w*6 + cout)
    p1 = conv_relu_pool(x_ref, w1_ref, b1_ref[...], kh=5, h_out=28)
    # conv2(6->16) + ReLU + pool: [14, 84] -> [5, 80]    (lane = w*16 + cout)
    p2 = conv_relu_pool(p1, w2_ref, b2_ref[...], kh=5, h_out=10)

    # fc(400 -> 10); PyTorch's NCHW flatten is folded into wfc_ref's layout.
    out = bfc_ref[...]                                           # [1, 10]
    for h in range(5):
        out = out + jnp.dot(p2[h:h + 1, :], wfc_ref[h],
                            preferred_element_type=f32)
    o_ref[...] = out.astype(o_ref.dtype)


# --------------------- host-side weight folding (run once) -----------------

def prepare_params(params):
    """Fold conv weights into per-kernel-row band matrices (width half of the
    2x2 pool folded in as even/odd column groups), tile the biases to the
    lane layout, and fold PyTorch's NCHW flatten into the fc weight."""
    w1 = params["w1"].astype(jnp.float32)    # [6, 1, 5, 5]  (o, c, dh, dw)
    b1 = params["b1"].astype(jnp.float32)    # [6]
    w2 = params["w2"].astype(jnp.float32)    # [16, 6, 5, 5]
    b2 = params["b2"].astype(jnp.float32)    # [16]
    wfc = params["wfc"].astype(jnp.float32)  # [10, 400]
    bfc = params["bfc"].astype(jnp.float32)  # [10]

    def band_selector(k, w_in, w_out):
        s = np.zeros((k, w_in, w_out), np.float32)   # s[dw, w+dw, w] = 1
        for dw in range(k):
            for w in range(w_out):
                s[dw, w + dw, w] = 1.0
        return s

    # conv1: band[dh][win, w*6+o] = w1[o, 0, dh, win-w]; split even/odd w.
    s1 = band_selector(5, 32, 28)
    band1 = jnp.einsum("dvw,ohd->hvwo", s1, w1[:, 0])        # [5, 32, 28, 6]
    w1f = jnp.stack([band1[:, :, 0::2, :].reshape(5, 32, 84),
                     band1[:, :, 1::2, :].reshape(5, 32, 84)])  # [2,5,32,84]
    b1r = jnp.tile(b1, 14).reshape(1, 84)

    # conv2: input lane layout is win*6 + cin.
    s2 = band_selector(5, 14, 10)
    band2 = jnp.einsum("dvw,ochd->hvcwo", s2, w2)            # [5,14,6,10,16]
    band2 = band2.reshape(5, 84, 10, 16)
    w2f = jnp.stack([band2[:, :, 0::2, :].reshape(5, 84, 80),
                     band2[:, :, 1::2, :].reshape(5, 84, 80)])  # [2,5,84,80]
    b2r = jnp.tile(b2, 5).reshape(1, 80)

    # fc: wfcf[h, w*16+c, n] = wfc[n, c*25 + h*5 + w]  (folds NCHW flatten).
    wfcf = jnp.transpose(wfc.reshape(10, 16, 5, 5), (2, 3, 1, 0))
    wfcf = wfcf.reshape(5, 80, 10)
    bfcr = bfc.reshape(1, 10)

    return {"w1f": w1f, "b1r": b1r, "w2f": w2f, "b2r": b2r,
            "wfcf": wfcf, "bfcr": bfcr}


# --------------------------------- forward ---------------------------------

@jax.jit
def dnn_v1_forward(prepped, x_nchw):
    B = x_nchw.shape[0]
    assert x_nchw.shape[1:] == (1, 32, 32), x_nchw.shape
    x = x_nchw[:, 0, :, :].astype(jnp.float32)               # [B, 32, 32]
    out = pl.pallas_call(
        _lenet_kernel,
        out_shape=jax.ShapeDtypeStruct((B, 1, 10), jnp.float32),
        grid=(B,),
        in_specs=[
            pl.BlockSpec((None, 32, 32), lambda b: (b, 0, 0)),      # image
            pl.BlockSpec((2, 5, 32, 84), lambda b: (0, 0, 0, 0)),   # w1f
            pl.BlockSpec((1, 84), lambda b: (0, 0)),                # b1r
            pl.BlockSpec((2, 5, 84, 80), lambda b: (0, 0, 0, 0)),   # w2f
            pl.BlockSpec((1, 80), lambda b: (0, 0)),                # b2r
            pl.BlockSpec((5, 80, 10), lambda b: (0, 0, 0)),         # wfcf
            pl.BlockSpec((1, 10), lambda b: (0, 0)),                # bfcr
        ],
        out_specs=pl.BlockSpec((None, 1, 10), lambda b: (b, 0, 0)),
        compiler_params=pltpu.CompilerParams(
            dimension_semantics=("parallel",)),
    )(x, prepped["w1f"], prepped["b1r"], prepped["w2f"], prepped["b2r"],
      prepped["wfcf"], prepped["bfcr"])
    return out[:, 0, :]


# Pure-JAX reference (mirrors the PyTorch forward) for correctness checking.
def dnn_v1_reference(params, x_nchw):
    dn = ("NCHW", "OIHW", "NCHW")
    y = lax.conv_general_dilated(x_nchw, params["w1"], (1, 1), "VALID",
                                 dimension_numbers=dn)
    y = jax.nn.relu(y + params["b1"][None, :, None, None])
    y = lax.reduce_window(y, -jnp.inf, lax.max, (1, 1, 2, 2), (1, 1, 2, 2),
                          "VALID")
    y = lax.conv_general_dilated(y, params["w2"], (1, 1), "VALID",
                                 dimension_numbers=dn)
    y = jax.nn.relu(y + params["b2"][None, :, None, None])
    y = lax.reduce_window(y, -jnp.inf, lax.max, (1, 1, 2, 2), (1, 1, 2, 2),
                          "VALID")
    y = y.reshape(y.shape[0], -1)
    return y @ params["wfc"].T + params["bfc"]


# ----------------------------------- main -----------------------------------

if __name__ == "__main__":
    key = jax.random.PRNGKey(0)
    ks = jax.random.split(key, 7)
    params = {
        "w1":  0.1 * jax.random.normal(ks[0], (6, 1, 5, 5), jnp.float32),
        "b1":  0.1 * jax.random.normal(ks[1], (6,), jnp.float32),
        "w2":  0.1 * jax.random.normal(ks[2], (16, 6, 5, 5), jnp.float32),
        "b2":  0.1 * jax.random.normal(ks[3], (16,), jnp.float32),
        "wfc": 0.1 * jax.random.normal(ks[4], (10, 16 * 5 * 5), jnp.float32),
        "bfc": 0.1 * jax.random.normal(ks[5], (10,), jnp.float32),
    }
    # conv1(5x5) -> pool -> conv2(5x5) -> pool -> 16*5*5 implies 32x32 input.
    x = jax.random.normal(ks[6], (2, 1, 32, 32), jnp.float32)

    prepped = prepare_params(params)                  # hoisted, run once
    out = jax.block_until_ready(dnn_v1_forward(prepped, x))
    ref = jax.block_until_ready(dnn_v1_reference(params, x))

    assert out.shape == (2, 10), out.shape
    np.testing.assert_allclose(np.asarray(out), np.asarray(ref),
                               rtol=2e-3, atol=2e-3)
    print("KERNEL_OK")
</pallas_src>

<mosaic_0001>
module attributes {stable_mosaic.version = 11 : i64} {
  func.func @_lenet_kernel(%arg0: i32, %arg1: memref<1x32x32xf32, #tpu.memory_space<vmem>>, %arg2: memref<2x5x32x84xf32, #tpu.memory_space<vmem>>, %arg3: memref<1x84xf32, #tpu.memory_space<vmem>>, %arg4: memref<2x5x84x80xf32, #tpu.memory_space<vmem>>, %arg5: memref<1x80xf32, #tpu.memory_space<vmem>>, %arg6: memref<5x80x10xf32, #tpu.memory_space<vmem>>, %arg7: memref<1x10xf32, #tpu.memory_space<vmem>>, %arg8: memref<1x1x10xf32, #tpu.memory_space<vmem>>) attributes {dimension_semantics = [#tpu.dimension_semantics<parallel>], iteration_bounds = array<i64: 2>, scalar_prefetch = 0 : i64, scratch_operands = 0 : i64, tpu.core_type = #tpu.core_type<tc>, window_params = [{transform_indices = @transform_0, window_bounds = array<i64: 1, 32, 32>}, {pipeline_mode = #tpu.pipeline_mode<synchronous>, transform_indices = @transform_1, window_bounds = array<i64: 2, 5, 32, 84>}, {pipeline_mode = #tpu.pipeline_mode<synchronous>, transform_indices = @transform_2, window_bounds = array<i64: 1, 84>}, {pipeline_mode = #tpu.pipeline_mode<synchronous>, transform_indices = @transform_3, window_bounds = array<i64: 2, 5, 84, 80>}, {pipeline_mode = #tpu.pipeline_mode<synchronous>, transform_indices = @transform_4, window_bounds = array<i64: 1, 80>}, {pipeline_mode = #tpu.pipeline_mode<synchronous>, transform_indices = @transform_5, window_bounds = array<i64: 5, 80, 10>}, {pipeline_mode = #tpu.pipeline_mode<synchronous>, transform_indices = @transform_6, window_bounds = array<i64: 1, 10>}, {transform_indices = @transform_7, window_bounds = array<i64: 1, 1, 10>}]} {
    %c0 = arith.constant 0 : index
    %c0_0 = arith.constant 0 : index
    %0 = vector.load %arg3[%c0, %c0_0] : memref<1x84xf32, #tpu.memory_space<vmem>>, vector<1x84xf32>
    %1 = tpu.iota {dimensions = array<i32: 0>} : vector<14x28xi32>
    %2 = tpu.iota {dimensions = array<i32: 1>} : vector<14x28xi32>
    %c2_i32 = arith.constant 2 : i32
    %3 = vector.broadcast %c2_i32 : i32 to vector<14x28xi32>
    %4 = arith.muli %3, %1 : vector<14x28xi32>
    %5 = arith.cmpi eq, %2, %4 : vector<14x28xi32>
    %cst = arith.constant 1.000000e+00 : f32
    %cst_1 = arith.constant 0.000000e+00 : f32
    %6 = vector.broadcast %cst : f32 to vector<14x28xf32>
    %7 = vector.broadcast %cst_1 : f32 to vector<14x28xf32>
    %8 = arith.select %5, %6, %7 : vector<14x28xi1>, vector<14x28xf32>
    %c2_i32_2 = arith.constant 2 : i32
    %9 = vector.broadcast %c2_i32_2 : i32 to vector<14x28xi32>
    %10 = arith.muli %9, %1 : vector<14x28xi32>
    %c1_i32 = arith.constant 1 : i32
    %11 = vector.broadcast %c1_i32 : i32 to vector<14x28xi32>
    %12 = arith.addi %10, %11 : vector<14x28xi32>
    %13 = arith.cmpi eq, %2, %12 : vector<14x28xi32>
    %cst_3 = arith.constant 1.000000e+00 : f32
    %cst_4 = arith.constant 0.000000e+00 : f32
    %14 = vector.broadcast %cst_3 : f32 to vector<14x28xf32>
    %15 = vector.broadcast %cst_4 : f32 to vector<14x28xf32>
    %16 = arith.select %13, %14, %15 : vector<14x28xi1>, vector<14x28xf32>
    %c0_5 = arith.constant 0 : index
    %c0_6 = arith.constant 0 : index
    %c0_7 = arith.constant 0 : index
    %17 = vector.load %arg1[%c0_5, %c0_6, %c0_7] : memref<1x32x32xf32, #tpu.memory_space<vmem>>, vector<1x28x32xf32>
    %18 = vector.shape_cast %17 : vector<1x28x32xf32> to vector<28x32xf32>
    %c0_8 = arith.constant 0 : index
    %c0_9 = arith.constant 0 : index
    %c0_10 = arith.constant 0 : index
    %c0_11 = arith.constant 0 : index
    %19 = vector.load %arg2[%c0_8, %c0_9, %c0_10, %c0_11] : memref<2x5x32x84xf32, #tpu.memory_space<vmem>>, vector<1x1x32x84xf32>
    %20 = vector.shape_cast %19 : vector<1x1x32x84xf32> to vector<32x84xf32>
    %cst_12 = arith.constant dense<0.000000e+00> : vector<28x84xf32>
    %21 = tpu.matmul %18, %20, %cst_12 {dimension_numbers = #tpu.dot_dimension_numbers<[1], [0], [0], [1], [0, 0, 1, 1], [], []>} : vector<28x32xf32>, vector<32x84xf32>, vector<28x84xf32> -> vector<28x84xf32>
    %c0_13 = arith.constant 0 : index
    %c1 = arith.constant 1 : index
    %c0_14 = arith.constant 0 : index
    %22 = vector.load %arg1[%c0_13, %c1, %c0_14] : memref<1x32x32xf32, #tpu.memory_space<vmem>>, vector<1x28x32xf32>
    %23 = vector.shape_cast %22 : vector<1x28x32xf32> to vector<28x32xf32>
    %c0_15 = arith.constant 0 : index
    %c1_16 = arith.constant 1 : index
    %c0_17 = arith.constant 0 : index
    %c0_18 = arith.constant 0 : index
    %24 = vector.load %arg2[%c0_15, %c1_16, %c0_17, %c0_18] : memref<2x5x32x84xf32, #tpu.memory_space<vmem>>, vector<1x1x32x84xf32>
    %25 = vector.shape_cast %24 : vector<1x1x32x84xf32> to vector<32x84xf32>
    %cst_19 = arith.constant dense<0.000000e+00> : vector<28x84xf32>
    %26 = tpu.matmul %23, %25, %cst_19 {dimension_numbers = #tpu.dot_dimension_numbers<[1], [0], [0], [1], [0, 0, 1, 1], [], []>} : vector<28x32xf32>, vector<32x84xf32>, vector<28x84xf32> -> vector<28x84xf32>
    %27 = arith.addf %21, %26 : vector<28x84xf32>
    %c0_20 = arith.constant 0 : index
    %c2 = arith.constant 2 : index
    %c0_21 = arith.constant 0 : index
    %28 = vector.load %arg1[%c0_20, %c2, %c0_21] : memref<1x32x32xf32, #tpu.memory_space<vmem>>, vector<1x28x32xf32>
    %29 = vector.shape_cast %28 : vector<1x28x32xf32> to vector<28x32xf32>
    %c0_22 = arith.constant 0 : index
    %c2_23 = arith.constant 2 : index
    %c0_24 = arith.constant 0 : index
    %c0_25 = arith.constant 0 : index
    %30 = vector.load %arg2[%c0_22, %c2_23, %c0_24, %c0_25] : memref<2x5x32x84xf32, #tpu.memory_space<vmem>>, vector<1x1x32x84xf32>
    %31 = vector.shape_cast %30 : vector<1x1x32x84xf32> to vector<32x84xf32>
    %cst_26 = arith.constant dense<0.000000e+00> : vector<28x84xf32>
    %32 = tpu.matmul %29, %31, %cst_26 {dimension_numbers = #tpu.dot_dimension_numbers<[1], [0], [0], [1], [0, 0, 1, 1], [], []>} : vector<28x32xf32>, vector<32x84xf32>, vector<28x84xf32> -> vector<28x84xf32>
    %33 = arith.addf %27, %32 : vector<28x84xf32>
    %c0_27 = arith.constant 0 : index
    %c3 = arith.constant 3 : index
    %c0_28 = arith.constant 0 : index
    %34 = vector.load %arg1[%c0_27, %c3, %c0_28] : memref<1x32x32xf32, #tpu.memory_space<vmem>>, vector<1x28x32xf32>
    %35 = vector.shape_cast %34 : vector<1x28x32xf32> to vector<28x32xf32>
    %c0_29 = arith.constant 0 : index
    %c3_30 = arith.constant 3 : index
    %c0_31 = arith.constant 0 : index
    %c0_32 = arith.constant 0 : index
    %36 = vector.load %arg2[%c0_29, %c3_30, %c0_31, %c0_32] : memref<2x5x32x84xf32, #tpu.memory_space<vmem>>, vector<1x1x32x84xf32>
    %37 = vector.shape_cast %36 : vector<1x1x32x84xf32> to vector<32x84xf32>
    %cst_33 = arith.constant dense<0.000000e+00> : vector<28x84xf32>
    %38 = tpu.matmul %35, %37, %cst_33 {dimension_numbers = #tpu.dot_dimension_numbers<[1], [0], [0], [1], [0, 0, 1, 1], [], []>} : vector<28x32xf32>, vector<32x84xf32>, vector<28x84xf32> -> vector<28x84xf32>
    %39 = arith.addf %33, %38 : vector<28x84xf32>
    %c0_34 = arith.constant 0 : index
    %c4 = arith.constant 4 : index
    %c0_35 = arith.constant 0 : index
    %40 = vector.load %arg1[%c0_34, %c4, %c0_35] : memref<1x32x32xf32, #tpu.memory_space<vmem>>, vector<1x28x32xf32>
    %41 = vector.shape_cast %40 : vector<1x28x32xf32> to vector<28x32xf32>
    %c0_36 = arith.constant 0 : index
    %c4_37 = arith.constant 4 : index
    %c0_38 = arith.constant 0 : index
    %c0_39 = arith.constant 0 : index
    %42 = vector.load %arg2[%c0_36, %c4_37, %c0_38, %c0_39] : memref<2x5x32x84xf32, #tpu.memory_space<vmem>>, vector<1x1x32x84xf32>
    %43 = vector.shape_cast %42 : vector<1x1x32x84xf32> to vector<32x84xf32>
    %cst_40 = arith.constant dense<0.000000e+00> : vector<28x84xf32>
    %44 = tpu.matmul %41, %43, %cst_40 {dimension_numbers = #tpu.dot_dimension_numbers<[1], [0], [0], [1], [0, 0, 1, 1], [], []>} : vector<28x32xf32>, vector<32x84xf32>, vector<28x84xf32> -> vector<28x84xf32>
    %45 = arith.addf %39, %44 : vector<28x84xf32>
    %cst_41 = arith.constant dense<0.000000e+00> : vector<14x84xf32>
    %46 = tpu.matmul %8, %45, %cst_41 {dimension_numbers = #tpu.dot_dimension_numbers<[1], [0], [0], [1], [0, 0, 1, 1], [], []>} : vector<14x28xf32>, vector<28x84xf32>, vector<14x84xf32> -> vector<14x84xf32>
    %cst_42 = arith.constant dense<0.000000e+00> : vector<14x84xf32>
    %47 = tpu.matmul %16, %45, %cst_42 {dimension_numbers = #tpu.dot_dimension_numbers<[1], [0], [0], [1], [0, 0, 1, 1], [], []>} : vector<14x28xf32>, vector<28x84xf32>, vector<14x84xf32> -> vector<14x84xf32>
    %48 = arith.maximumf %46, %47 : vector<14x84xf32>
    %c0_43 = arith.constant 0 : index
    %c0_44 = arith.constant 0 : index
    %c0_45 = arith.constant 0 : index
    %49 = vector.load %arg1[%c0_43, %c0_44, %c0_45] : memref<1x32x32xf32, #tpu.memory_space<vmem>>, vector<1x28x32xf32>
    %50 = vector.shape_cast %49 : vector<1x28x32xf32> to vector<28x32xf32>
    %c1_46 = arith.constant 1 : index
    %c0_47 = arith.constant 0 : index
    %c0_48 = arith.constant 0 : index
    %c0_49 = arith.constant 0 : index
    %51 = vector.load %arg2[%c1_46, %c0_47, %c0_48, %c0_49] : memref<2x5x32x84xf32, #tpu.memory_space<vmem>>, vector<1x1x32x84xf32>
    %52 = vector.shape_cast %51 : vector<1x1x32x84xf32> to vector<32x84xf32>
    %cst_50 = arith.constant dense<0.000000e+00> : vector<28x84xf32>
    %53 = tpu.matmul %50, %52, %cst_50 {dimension_numbers = #tpu.dot_dimension_numbers<[1], [0], [0], [1], [0, 0, 1, 1], [], []>} : vector<28x32xf32>, vector<32x84xf32>, vector<28x84xf32> -> vector<28x84xf32>
    %c0_51 = arith.constant 0 : index
    %c1_52 = arith.constant 1 : index
    %c0_53 = arith.constant 0 : index
    %54 = vector.load %arg1[%c0_51, %c1_52, %c0_53] : memref<1x32x32xf32, #tpu.memory_space<vmem>>, vector<1x28x32xf32>
    %55 = vector.shape_cast %54 : vector<1x28x32xf32> to vector<28x32xf32>
    %c1_54 = arith.constant 1 : index
    %c1_55 = arith.constant 1 : index
    %c0_56 = arith.constant 0 : index
    %c0_57 = arith.constant 0 : index
    %56 = vector.load %arg2[%c1_54, %c1_55, %c0_56, %c0_57] : memref<2x5x32x84xf32, #tpu.memory_space<vmem>>, vector<1x1x32x84xf32>
    %57 = vector.shape_cast %56 : vector<1x1x32x84xf32> to vector<32x84xf32>
    %cst_58 = arith.constant dense<0.000000e+00> : vector<28x84xf32>
    %58 = tpu.matmul %55, %57, %cst_58 {dimension_numbers = #tpu.dot_dimension_numbers<[1], [0], [0], [1], [0, 0, 1, 1], [], []>} : vector<28x32xf32>, vector<32x84xf32>, vector<28x84xf32> -> vector<28x84xf32>
    %59 = arith.addf %53, %58 : vector<28x84xf32>
    %c0_59 = arith.constant 0 : index
    %c2_60 = arith.constant 2 : index
    %c0_61 = arith.constant 0 : index
    %60 = vector.load %arg1[%c0_59, %c2_60, %c0_61] : memref<1x32x32xf32, #tpu.memory_space<vmem>>, vector<1x28x32xf32>
    %61 = vector.shape_cast %60 : vector<1x28x32xf32> to vector<28x32xf32>
    %c1_62 = arith.constant 1 : index
    %c2_63 = arith.constant 2 : index
    %c0_64 = arith.constant 0 : index
    %c0_65 = arith.constant 0 : index
    %62 = vector.load %arg2[%c1_62, %c2_63, %c0_64, %c0_65] : memref<2x5x32x84xf32, #tpu.memory_space<vmem>>, vector<1x1x32x84xf32>
    %63 = vector.shape_cast %62 : vector<1x1x32x84xf32> to vector<32x84xf32>
    %cst_66 = arith.constant dense<0.000000e+00> : vector<28x84xf32>
    %64 = tpu.matmul %61, %63, %cst_66 {dimension_numbers = #tpu.dot_dimension_numbers<[1], [0], [0], [1], [0, 0, 1, 1], [], []>} : vector<28x32xf32>, vector<32x84xf32>, vector<28x84xf32> -> vector<28x84xf32>
    %65 = arith.addf %59, %64 : vector<28x84xf32>
    %c0_67 = arith.constant 0 : index
    %c3_68 = arith.constant 3 : index
    %c0_69 = arith.constant 0 : index
    %66 = vector.load %arg1[%c0_67, %c3_68, %c0_69] : memref<1x32x32xf32, #tpu.memory_space<vmem>>, vector<1x28x32xf32>
    %67 = vector.shape_cast %66 : vector<1x28x32xf32> to vector<28x32xf32>
    %c1_70 = arith.constant 1 : index
    %c3_71 = arith.constant 3 : index
    %c0_72 = arith.constant 0 : index
    %c0_73 = arith.constant 0 : index
    %68 = vector.load %arg2[%c1_70, %c3_71, %c0_72, %c0_73] : memref<2x5x32x84xf32, #tpu.memory_space<vmem>>, vector<1x1x32x84xf32>
    %69 = vector.shape_cast %68 : vector<1x1x32x84xf32> to vector<32x84xf32>
    %cst_74 = arith.constant dense<0.000000e+00> : vector<28x84xf32>
    %70 = tpu.matmul %67, %69, %cst_74 {dimension_numbers = #tpu.dot_dimension_numbers<[1], [0], [0], [1], [0, 0, 1, 1], [], []>} : vector<28x32xf32>, vector<32x84xf32>, vector<28x84xf32> -> vector<28x84xf32>
    %71 = arith.addf %65, %70 : vector<28x84xf32>
    %c0_75 = arith.constant 0 : index
    %c4_76 = arith.constant 4 : index
    %c0_77 = arith.constant 0 : index
    %72 = vector.load %arg1[%c0_75, %c4_76, %c0_77] : memref<1x32x32xf32, #tpu.memory_space<vmem>>, vector<1x28x32xf32>
    %73 = vector.shape_cast %72 : vector<1x28x32xf32> to vector<28x32xf32>
    %c1_78 = arith.constant 1 : index
    %c4_79 = arith.constant 4 : index
    %c0_80 = arith.constant 0 : index
    %c0_81 = arith.constant 0 : index
    %74 = vector.load %arg2[%c1_78, %c4_79, %c0_80, %c0_81] : memref<2x5x32x84xf32, #tpu.memory_space<vmem>>, vector<1x1x32x84xf32>
    %75 = vector.shape_cast %74 : vector<1x1x32x84xf32> to vector<32x84xf32>
    %cst_82 = arith.constant dense<0.000000e+00> : vector<28x84xf32>
    %76 = tpu.matmul %73, %75, %cst_82 {dimension_numbers = #tpu.dot_dimension_numbers<[1], [0], [0], [1], [0, 0, 1, 1], [], []>} : vector<28x32xf32>, vector<32x84xf32>, vector<28x84xf32> -> vector<28x84xf32>
    %77 = arith.addf %71, %76 : vector<28x84xf32>
    %cst_83 = arith.constant dense<0.000000e+00> : vector<14x84xf32>
    %78 = tpu.matmul %8, %77, %cst_83 {dimension_numbers = #tpu.dot_dimension_numbers<[1], [0], [0], [1], [0, 0, 1, 1], [], []>} : vector<14x28xf32>, vector<28x84xf32>, vector<14x84xf32> -> vector<14x84xf32>
    %cst_84 = arith.constant dense<0.000000e+00> : vector<14x84xf32>
    %79 = tpu.matmul %16, %77, %cst_84 {dimension_numbers = #tpu.dot_dimension_numbers<[1], [0], [0], [1], [0, 0, 1, 1], [], []>} : vector<14x28xf32>, vector<28x84xf32>, vector<14x84xf32> -> vector<14x84xf32>
    %80 = arith.maximumf %78, %79 : vector<14x84xf32>
    %81 = arith.maximumf %48, %80 : vector<14x84xf32>
    %82 = vector.broadcast %0 : vector<1x84xf32> to vector<14x84xf32>
    %83 = arith.addf %81, %82 : vector<14x84xf32>
    %cst_85 = arith.constant 0.000000e+00 : f32
    %84 = vector.broadcast %cst_85 : f32 to vector<14x84xf32>
    %85 = arith.maximumf %83, %84 : vector<14x84xf32>
    %c0_86 = arith.constant 0 : index
    %c0_87 = arith.constant 0 : index
    %86 = vector.load %arg5[%c0_86, %c0_87] : memref<1x80xf32, #tpu.memory_space<vmem>>, vector<1x80xf32>
    %87 = tpu.iota {dimensions = array<i32: 0>} : vector<5x10xi32>
    %88 = tpu.iota {dimensions = array<i32: 1>} : vector<5x10xi32>
    %c2_i32_88 = arith.constant 2 : i32
    %89 = vector.broadcast %c2_i32_88 : i32 to vector<5x10xi32>
    %90 = arith.muli %89, %87 : vector<5x10xi32>
    %91 = arith.cmpi eq, %88, %90 : vector<5x10xi32>
    %cst_89 = arith.constant 1.000000e+00 : f32
    %cst_90 = arith.constant 0.000000e+00 : f32
    %92 = vector.broadcast %cst_89 : f32 to vector<5x10xf32>
    %93 = vector.broadcast %cst_90 : f32 to vector<5x10xf32>
    %94 = arith.select %91, %92, %93 : vector<5x10xi1>, vector<5x10xf32>
    %c2_i32_91 = arith.constant 2 : i32
    %95 = vector.broadcast %c2_i32_91 : i32 to vector<5x10xi32>
    %96 = arith.muli %95, %87 : vector<5x10xi32>
    %c1_i32_92 = arith.constant 1 : i32
    %97 = vector.broadcast %c1_i32_92 : i32 to vector<5x10xi32>
    %98 = arith.addi %96, %97 : vector<5x10xi32>
    %99 = arith.cmpi eq, %88, %98 : vector<5x10xi32>
    %cst_93 = arith.constant 1.000000e+00 : f32
    %cst_94 = arith.constant 0.000000e+00 : f32
    %100 = vector.broadcast %cst_93 : f32 to vector<5x10xf32>
    %101 = vector.broadcast %cst_94 : f32 to vector<5x10xf32>
    %102 = arith.select %99, %100, %101 : vector<5x10xi1>, vector<5x10xf32>
    %103 = vector.extract_strided_slice %85 {offsets = [0, 0], sizes = [10, 84], strides = [1, 1]} : vector<14x84xf32> to vector<10x84xf32>
    %c0_95 = arith.constant 0 : index
    %c0_96 = arith.constant 0 : index
    %c0_97 = arith.constant 0 : index
    %c0_98 = arith.constant 0 : index
    %104 = vector.load %arg4[%c0_95, %c0_96, %c0_97, %c0_98] : memref<2x5x84x80xf32, #tpu.memory_space<vmem>>, vector<1x1x84x80xf32>
    %105 = vector.shape_cast %104 : vector<1x1x84x80xf32> to vector<84x80xf32>
    %cst_99 = arith.constant dense<0.000000e+00> : vector<10x80xf32>
    %106 = tpu.matmul %103, %105, %cst_99 {dimension_numbers = #tpu.dot_dimension_numbers<[1], [0], [0], [1], [0, 0, 1, 1], [], []>} : vector<10x84xf32>, vector<84x80xf32>, vector<10x80xf32> -> vector<10x80xf32>
    %107 = vector.extract_strided_slice %85 {offsets = [1, 0], sizes = [10, 84], strides = [1, 1]} : vector<14x84xf32> to vector<10x84xf32>
    %c0_100 = arith.constant 0 : index
    %c1_101 = arith.constant 1 : index
    %c0_102 = arith.constant 0 : index
    %c0_103 = arith.constant 0 : index
    %108 = vector.load %arg4[%c0_100, %c1_101, %c0_102, %c0_103] : memref<2x5x84x80xf32, #tpu.memory_space<vmem>>, vector<1x1x84x80xf32>
    %109 = vector.shape_cast %108 : vector<1x1x84x80xf32> to vector<84x80xf32>
    %cst_104 = arith.constant dense<0.000000e+00> : vector<10x80xf32>
    %110 = tpu.matmul %107, %109, %cst_104 {dimension_numbers = #tpu.dot_dimension_numbers<[1], [0], [0], [1], [0, 0, 1, 1], [], []>} : vector<10x84xf32>, vector<84x80xf32>, vector<10x80xf32> -> vector<10x80xf32>
    %111 = arith.addf %106, %110 : vector<10x80xf32>
    %112 = vector.extract_strided_slice %85 {offsets = [2, 0], sizes = [10, 84], strides = [1, 1]} : vector<14x84xf32> to vector<10x84xf32>
    %c0_105 = arith.constant 0 : index
    %c2_106 = arith.constant 2 : index
    %c0_107 = arith.constant 0 : index
    %c0_108 = arith.constant 0 : index
    %113 = vector.load %arg4[%c0_105, %c2_106, %c0_107, %c0_108] : memref<2x5x84x80xf32, #tpu.memory_space<vmem>>, vector<1x1x84x80xf32>
    %114 = vector.shape_cast %113 : vector<1x1x84x80xf32> to vector<84x80xf32>
    %cst_109 = arith.constant dense<0.000000e+00> : vector<10x80xf32>
    %115 = tpu.matmul %112, %114, %cst_109 {dimension_numbers = #tpu.dot_dimension_numbers<[1], [0], [0], [1], [0, 0, 1, 1], [], []>} : vector<10x84xf32>, vector<84x80xf32>, vector<10x80xf32> -> vector<10x80xf32>
    %116 = arith.addf %111, %115 : vector<10x80xf32>
    %117 = vector.extract_strided_slice %85 {offsets = [3, 0], sizes = [10, 84], strides = [1, 1]} : vector<14x84xf32> to vector<10x84xf32>
    %c0_110 = arith.constant 0 : index
    %c3_111 = arith.constant 3 : index
    %c0_112 = arith.constant 0 : index
    %c0_113 = arith.constant 0 : index
    %118 = vector.load %arg4[%c0_110, %c3_111, %c0_112, %c0_113] : memref<2x5x84x80xf32, #tpu.memory_space<vmem>>, vector<1x1x84x80xf32>
    %119 = vector.shape_cast %118 : vector<1x1x84x80xf32> to vector<84x80xf32>
    %cst_114 = arith.constant dense<0.000000e+00> : vector<10x80xf32>
    %120 = tpu.matmul %117, %119, %cst_114 {dimension_numbers = #tpu.dot_dimension_numbers<[1], [0], [0], [1], [0, 0, 1, 1], [], []>} : vector<10x84xf32>, vector<84x80xf32>, vector<10x80xf32> -> vector<10x80xf32>
    %121 = arith.addf %116, %120 : vector<10x80xf32>
    %122 = vector.extract_strided_slice %85 {offsets = [4, 0], sizes = [10, 84], strides = [1, 1]} : vector<14x84xf32> to vector<10x84xf32>
    %c0_115 = arith.constant 0 : index
    %c4_116 = arith.constant 4 : index
    %c0_117 = arith.constant 0 : index
    %c0_118 = arith.constant 0 : index
    %123 = vector.load %arg4[%c0_115, %c4_116, %c0_117, %c0_118] : memref<2x5x84x80xf32, #tpu.memory_space<vmem>>, vector<1x1x84x80xf32>
    %124 = vector.shape_cast %123 : vector<1x1x84x80xf32> to vector<84x80xf32>
    %cst_119 = arith.constant dense<0.000000e+00> : vector<10x80xf32>
    %125 = tpu.matmul %122, %124, %cst_119 {dimension_numbers = #tpu.dot_dimension_numbers<[1], [0], [0], [1], [0, 0, 1, 1], [], []>} : vector<10x84xf32>, vector<84x80xf32>, vector<10x80xf32> -> vector<10x80xf32>
    %126 = arith.addf %121, %125 : vector<10x80xf32>
    %cst_120 = arith.constant dense<0.000000e+00> : vector<5x80xf32>
    %127 = tpu.matmul %94, %126, %cst_120 {dimension_numbers = #tpu.dot_dimension_numbers<[1], [0], [0], [1], [0, 0, 1, 1], [], []>} : vector<5x10xf32>, vector<10x80xf32>, vector<5x80xf32> -> vector<5x80xf32>
    %cst_121 = arith.constant dense<0.000000e+00> : vector<5x80xf32>
    %128 = tpu.matmul %102, %126, %cst_121 {dimension_numbers = #tpu.dot_dimension_numbers<[1], [0], [0], [1], [0, 0, 1, 1], [], []>} : vector<5x10xf32>, vector<10x80xf32>, vector<5x80xf32> -> vector<5x80xf32>
    %129 = arith.maximumf %127, %128 : vector<5x80xf32>
    %130 = vector.extract_strided_slice %85 {offsets = [0, 0], sizes = [10, 84], strides = [1, 1]} : vector<14x84xf32> to vector<10x84xf32>
    %c1_122 = arith.constant 1 : index
    %c0_123 = arith.constant 0 : index
    %c0_124 = arith.constant 0 : index
    %c0_125 = arith.constant 0 : index
    %131 = vector.load %arg4[%c1_122, %c0_123, %c0_124, %c0_125] : memref<2x5x84x80xf32, #tpu.memory_space<vmem>>, vector<1x1x84x80xf32>
    %132 = vector.shape_cast %131 : vector<1x1x84x80xf32> to vector<84x80xf32>
    %cst_126 = arith.constant dense<0.000000e+00> : vector<10x80xf32>
    %133 = tpu.matmul %130, %132, %cst_126 {dimension_numbers = #tpu.dot_dimension_numbers<[1], [0], [0], [1], [0, 0, 1, 1], [], []>} : vector<10x84xf32>, vector<84x80xf32>, vector<10x80xf32> -> vector<10x80xf32>
    %134 = vector.extract_strided_slice %85 {offsets = [1, 0], sizes = [10, 84], strides = [1, 1]} : vector<14x84xf32> to vector<10x84xf32>
    %c1_127 = arith.constant 1 : index
    %c1_128 = arith.constant 1 : index
    %c0_129 = arith.constant 0 : index
    %c0_130 = arith.constant 0 : index
    %135 = vector.load %arg4[%c1_127, %c1_128, %c0_129, %c0_130] : memref<2x5x84x80xf32, #tpu.memory_space<vmem>>, vector<1x1x84x80xf32>
    %136 = vector.shape_cast %135 : vector<1x1x84x80xf32> to vector<84x80xf32>
    %cst_131 = arith.constant dense<0.000000e+00> : vector<10x80xf32>
    %137 = tpu.matmul %134, %136, %cst_131 {dimension_numbers = #tpu.dot_dimension_numbers<[1], [0], [0], [1], [0, 0, 1, 1], [], []>} : vector<10x84xf32>, vector<84x80xf32>, vector<10x80xf32> -> vector<10x80xf32>
    %138 = arith.addf %133, %137 : vector<10x80xf32>
    %139 = vector.extract_strided_slice %85 {offsets = [2, 0], sizes = [10, 84], strides = [1, 1]} : vector<14x84xf32> to vector<10x84xf32>
    %c1_132 = arith.constant 1 : index
    %c2_133 = arith.constant 2 : index
    %c0_134 = arith.constant 0 : index
    %c0_135 = arith.constant 0 : index
    %140 = vector.load %arg4[%c1_132, %c2_133, %c0_134, %c0_135] : memref<2x5x84x80xf32, #tpu.memory_space<vmem>>, vector<1x1x84x80xf32>
    %141 = vector.shape_cast %140 : vector<1x1x84x80xf32> to vector<84x80xf32>
    %cst_136 = arith.constant dense<0.000000e+00> : vector<10x80xf32>
    %142 = tpu.matmul %139, %141, %cst_136 {dimension_numbers = #tpu.dot_dimension_numbers<[1], [0], [0], [1], [0, 0, 1, 1], [], []>} : vector<10x84xf32>, vector<84x80xf32>, vector<10x80xf32> -> vector<10x80xf32>
    %143 = arith.addf %138, %142 : vector<10x80xf32>
    %144 = vector.extract_strided_slice %85 {offsets = [3, 0], sizes = [10, 84], strides = [1, 1]} : vector<14x84xf32> to vector<10x84xf32>
    %c1_137 = arith.constant 1 : index
    %c3_138 = arith.constant 3 : index
    %c0_139 = arith.constant 0 : index
    %c0_140 = arith.constant 0 : index
    %145 = vector.load %arg4[%c1_137, %c3_138, %c0_139, %c0_140] : memref<2x5x84x80xf32, #tpu.memory_space<vmem>>, vector<1x1x84x80xf32>
    %146 = vector.shape_cast %145 : vector<1x1x84x80xf32> to vector<84x80xf32>
    %cst_141 = arith.constant dense<0.000000e+00> : vector<10x80xf32>
    %147 = tpu.matmul %144, %146, %cst_141 {dimension_numbers = #tpu.dot_dimension_numbers<[1], [0], [0], [1], [0, 0, 1, 1], [], []>} : vector<10x84xf32>, vector<84x80xf32>, vector<10x80xf32> -> vector<10x80xf32>
    %148 = arith.addf %143, %147 : vector<10x80xf32>
    %149 = vector.extract_strided_slice %85 {offsets = [4, 0], sizes = [10, 84], strides = [1, 1]} : vector<14x84xf32> to vector<10x84xf32>
    %c1_142 = arith.constant 1 : index
    %c4_143 = arith.constant 4 : index
    %c0_144 = arith.constant 0 : index
    %c0_145 = arith.constant 0 : index
    %150 = vector.load %arg4[%c1_142, %c4_143, %c0_144, %c0_145] : memref<2x5x84x80xf32, #tpu.memory_space<vmem>>, vector<1x1x84x80xf32>
    %151 = vector.shape_cast %150 : vector<1x1x84x80xf32> to vector<84x80xf32>
    %cst_146 = arith.constant dense<0.000000e+00> : vector<10x80xf32>
    %152 = tpu.matmul %149, %151, %cst_146 {dimension_numbers = #tpu.dot_dimension_numbers<[1], [0], [0], [1], [0, 0, 1, 1], [], []>} : vector<10x84xf32>, vector<84x80xf32>, vector<10x80xf32> -> vector<10x80xf32>
    %153 = arith.addf %148, %152 : vector<10x80xf32>
    %cst_147 = arith.constant dense<0.000000e+00> : vector<5x80xf32>
    %154 = tpu.matmul %94, %153, %cst_147 {dimension_numbers = #tpu.dot_dimension_numbers<[1], [0], [0], [1], [0, 0, 1, 1], [], []>} : vector<5x10xf32>, vector<10x80xf32>, vector<5x80xf32> -> vector<5x80xf32>
    %cst_148 = arith.constant dense<0.000000e+00> : vector<5x80xf32>
    %155 = tpu.matmul %102, %153, %cst_148 {dimension_numbers = #tpu.dot_dimension_numbers<[1], [0], [0], [1], [0, 0, 1, 1], [], []>} : vector<5x10xf32>, vector<10x80xf32>, vector<5x80xf32> -> vector<5x80xf32>
    %156 = arith.maximumf %154, %155 : vector<5x80xf32>
    %157 = arith.maximumf %129, %156 : vector<5x80xf32>
    %158 = vector.broadcast %86 : vector<1x80xf32> to vector<5x80xf32>
    %159 = arith.addf %157, %158 : vector<5x80xf32>
    %cst_149 = arith.constant 0.000000e+00 : f32
    %160 = vector.broadcast %cst_149 : f32 to vector<5x80xf32>
    %161 = arith.maximumf %159, %160 : vector<5x80xf32>
    %c0_150 = arith.constant 0 : index
    %c0_151 = arith.constant 0 : index
    %162 = vector.load %arg7[%c0_150, %c0_151] : memref<1x10xf32, #tpu.memory_space<vmem>>, vector<1x10xf32>
    %163 = vector.extract_strided_slice %161 {offsets = [0, 0], sizes = [1, 80], strides = [1, 1]} : vector<5x80xf32> to vector<1x80xf32>
    %c0_152 = arith.constant 0 : index
    %c0_153 = arith.constant 0 : index
    %c0_154 = arith.constant 0 : index
    %164 = vector.load %arg6[%c0_152, %c0_153, %c0_154] : memref<5x80x10xf32, #tpu.memory_space<vmem>>, vector<1x80x10xf32>
    %165 = vector.shape_cast %164 : vector<1x80x10xf32> to vector<80x10xf32>
    %cst_155 = arith.constant dense<0.000000e+00> : vector<1x10xf32>
    %166 = tpu.matmul %163, %165, %cst_155 {dimension_numbers = #tpu.dot_dimension_numbers<[1], [0], [0], [1], [0, 0, 1, 1], [], []>} : vector<1x80xf32>, vector<80x10xf32>, vector<1x10xf32> -> vector<1x10xf32>
    %167 = arith.addf %162, %166 : vector<1x10xf32>
    %168 = vector.extract_strided_slice %161 {offsets = [1, 0], sizes = [1, 80], strides = [1, 1]} : vector<5x80xf32> to vector<1x80xf32>
    %c1_156 = arith.constant 1 : index
    %c0_157 = arith.constant 0 : index
    %c0_158 = arith.constant 0 : index
    %169 = vector.load %arg6[%c1_156, %c0_157, %c0_158] : memref<5x80x10xf32, #tpu.memory_space<vmem>>, vector<1x80x10xf32>
    %170 = vector.shape_cast %169 : vector<1x80x10xf32> to vector<80x10xf32>
    %cst_159 = arith.constant dense<0.000000e+00> : vector<1x10xf32>
    %171 = tpu.matmul %168, %170, %cst_159 {dimension_numbers = #tpu.dot_dimension_numbers<[1], [0], [0], [1], [0, 0, 1, 1], [], []>} : vector<1x80xf32>, vector<80x10xf32>, vector<1x10xf32> -> vector<1x10xf32>
    %172 = arith.addf %167, %171 : vector<1x10xf32>
    %173 = vector.extract_strided_slice %161 {offsets = [2, 0], sizes = [1, 80], strides = [1, 1]} : vector<5x80xf32> to vector<1x80xf32>
    %c2_160 = arith.constant 2 : index
    %c0_161 = arith.constant 0 : index
    %c0_162 = arith.constant 0 : index
    %174 = vector.load %arg6[%c2_160, %c0_161, %c0_162] : memref<5x80x10xf32, #tpu.memory_space<vmem>>, vector<1x80x10xf32>
    %175 = vector.shape_cast %174 : vector<1x80x10xf32> to vector<80x10xf32>
    %cst_163 = arith.constant dense<0.000000e+00> : vector<1x10xf32>
    %176 = tpu.matmul %173, %175, %cst_163 {dimension_numbers = #tpu.dot_dimension_numbers<[1], [0], [0], [1], [0, 0, 1, 1], [], []>} : vector<1x80xf32>, vector<80x10xf32>, vector<1x10xf32> -> vector<1x10xf32>
    %177 = arith.addf %172, %176 : vector<1x10xf32>
    %178 = vector.extract_strided_slice %161 {offsets = [3, 0], sizes = [1, 80], strides = [1, 1]} : vector<5x80xf32> to vector<1x80xf32>
    %c3_164 = arith.constant 3 : index
    %c0_165 = arith.constant 0 : index
    %c0_166 = arith.constant 0 : index
    %179 = vector.load %arg6[%c3_164, %c0_165, %c0_166] : memref<5x80x10xf32, #tpu.memory_space<vmem>>, vector<1x80x10xf32>
    %180 = vector.shape_cast %179 : vector<1x80x10xf32> to vector<80x10xf32>
    %cst_167 = arith.constant dense<0.000000e+00> : vector<1x10xf32>
    %181 = tpu.matmul %178, %180, %cst_167 {dimension_numbers = #tpu.dot_dimension_numbers<[1], [0], [0], [1], [0, 0, 1, 1], [], []>} : vector<1x80xf32>, vector<80x10xf32>, vector<1x10xf32> -> vector<1x10xf32>
    %182 = arith.addf %177, %181 : vector<1x10xf32>
    %183 = vector.extract_strided_slice %161 {offsets = [4, 0], sizes = [1, 80], strides = [1, 1]} : vector<5x80xf32> to vector<1x80xf32>
    %c4_168 = arith.constant 4 : index
    %c0_169 = arith.constant 0 : index
    %c0_170 = arith.constant 0 : index
    %184 = vector.load %arg6[%c4_168, %c0_169, %c0_170] : memref<5x80x10xf32, #tpu.memory_space<vmem>>, vector<1x80x10xf32>
    %185 = vector.shape_cast %184 : vector<1x80x10xf32> to vector<80x10xf32>
    %cst_171 = arith.constant dense<0.000000e+00> : vector<1x10xf32>
    %186 = tpu.matmul %183, %185, %cst_171 {dimension_numbers = #tpu.dot_dimension_numbers<[1], [0], [0], [1], [0, 0, 1, 1], [], []>} : vector<1x80xf32>, vector<80x10xf32>, vector<1x10xf32> -> vector<1x10xf32>
    %187 = arith.addf %182, %186 : vector<1x10xf32>
    %c0_172 = arith.constant 0 : index
    %c0_173 = arith.constant 0 : index
    %c0_174 = arith.constant 0 : index
    %188 = vector.load %arg8[%c0_172, %c0_173, %c0_174] : memref<1x1x10xf32, #tpu.memory_space<vmem>>, vector<1x1x10xf32>
    %189 = vector.shape_cast %188 : vector<1x1x10xf32> to vector<1x10xf32>
    %190 = vector.shape_cast %187 : vector<1x10xf32> to vector<1x1x10xf32>
    tpu.vector_store %arg8[%c0_172, %c0_173, %c0_174], %190 {strides = array<i32>} : memref<1x1x10xf32, #tpu.memory_space<vmem>>, vector<1x1x10xf32>,
    return
  }
  func.func @transform_0(%arg0: i32) -> (i32, i32, i32) {
    %c0_i32 = arith.constant 0 : i32
    %c0_i32_0 = arith.constant 0 : i32
    %c0_i32_1 = arith.constant 0 : i32
    return %arg0, %c0_i32, %c0_i32_0 : i32, i32, i32
  }
  func.func @transform_1(%arg0: i32) -> (i32, i32, i32, i32) {
    %c0_i32 = arith.constant 0 : i32
    %c0_i32_0 = arith.constant 0 : i32
    %c0_i32_1 = arith.constant 0 : i32
    %c0_i32_2 = arith.constant 0 : i32
    %c0_i32_3 = arith.constant 0 : i32
    return %c0_i32, %c0_i32_0, %c0_i32_1, %c0_i32_2 : i32, i32, i32, i32
  }
  func.func @transform_2(%arg0: i32) -> (i32, i32) {
    %c0_i32 = arith.constant 0 : i32
    %c0_i32_0 = arith.constant 0 : i32
    %c0_i32_1 = arith.constant 0 : i32
    return %c0_i32, %c0_i32_0 : i32, i32
  }
  func.func @transform_3(%arg0: i32) -> (i32, i32, i32, i32) {
    %c0_i32 = arith.constant 0 : i32
    %c0_i32_0 = arith.constant 0 : i32
    %c0_i32_1 = arith.constant 0 : i32
    %c0_i32_2 = arith.constant 0 : i32
    %c0_i32_3 = arith.constant 0 : i32
    return %c0_i32, %c0_i32_0, %c0_i32_1, %c0_i32_2 : i32, i32, i32, i32
  }
  func.func @transform_4(%arg0: i32) -> (i32, i32) {
    %c0_i32 = arith.constant 0 : i32
    %c0_i32_0 = arith.constant 0 : i32
    %c0_i32_1 = arith.constant 0 : i32
    return %c0_i32, %c0_i32_0 : i32, i32
  }
  func.func @transform_5(%arg0: i32) -> (i32, i32, i32) {
    %c0_i32 = arith.constant 0 : i32
    %c0_i32_0 = arith.constant 0 : i32
    %c0_i32_1 = arith.constant 0 : i32
    %c0_i32_2 = arith.constant 0 : i32
    return %c0_i32, %c0_i32_0, %c0_i32_1 : i32, i32, i32
  }
  func.func @transform_6(%arg0: i32) -> (i32, i32) {
    %c0_i32 = arith.constant 0 : i32
    %c0_i32_0 = arith.constant 0 : i32
    %c0_i32_1 = arith.constant 0 : i32
    return %c0_i32, %c0_i32_0 : i32, i32
  }
  func.func @transform_7(%arg0: i32) -> (i32, i32, i32) {
    %c0_i32 = arith.constant 0 : i32
    %c0_i32_0 = arith.constant 0 : i32
    %c0_i32_1 = arith.constant 0 : i32
    return %arg0, %c0_i32, %c0_i32_0 : i32, i32, i32
  }
}

</mosaic_0001>

<bundles_post_ra>
// kernel: dnn_v1_forward.1
= control target key start
LH: loop header
LB: loop body
LE: loop exit
PB: predicated region body
PF: predicated region fallthrough
CT: control target
= control target key end

     0   :  { %12 = vsyncpa [#allocation3], 0  ;;  %s6263_s0 = inlined_call_operand.vmem [shape: f32[2,32,32], index: 0, kind: input, shape index: {}]   ;;  %s6264_s1 = inlined_call_operand.vmem [shape: f32[2,5,32,84], index: 1, kind: input, shape index: {}]   ;;  %s6265_s2 = inlined_call_operand.vmem [shape: f32[1,84], index: 2, kind: input, shape index: {}]   ;;  %s6266_s3 = inlined_call_operand.vmem [shape: f32[2,5,84,80], index: 3, kind: input, shape index: {}]   ;;  %s6267_s4 = inlined_call_operand.vmem [shape: f32[1,80], index: 4, kind: input, shape index: {}]   ;;  %s6268_s5 = inlined_call_operand.vmem [shape: f32[5,80,10], index: 5, kind: input, shape index: {}]   ;;  %s6269_s6 = inlined_call_operand.vmem [shape: f32[1,10], index: 6, kind: input, shape index: {}]   ;;  %s6270_s7 = inlined_call_operand.hbm [shape: f32[2,1,10], index: 7, kind: output, shape index: {}]  }
   0x1   :  { %14 = vsyncpa [#allocation3 + $0x1], 0  ;;  %s5163_s24 = smov 0   ;;  %s5165_s25 = smov 0  }
   0x2   :  { %s5167_s26 = smov 0   ;;  %s5169_s27 = smov 0  }
   0x3 LB: > { %s5184_s28 = sadd.s32 4294967295, %s5116_s27   ;;  %s3383_s29 = sadd.s32 4294967294, %s5116_s27   ;;  %s5116_s27 = sphi %s5169_s27, %s6282_s27   ;;  %s5112_s26 = sphi %s5167_s26, %s6281_s26   ;;  %s5108_s25 = sphi %s5165_s25, %s6280_s25   ;;  %s5104_s24 = sphi %s5163_s24, %s6279_s24  }
   0x4   : > { %s5188_s30 = sadd.s32 1, %s5116_s27   ;;  %s179_s8 = sadd.s32 1, %s5112_s26 }
   0x5   : > { %s176_s9 = ssub.s32 %s5116_s27, %s5188_s30  ;;  %p189_p0 = scmp.ne.s32.totalorder %s5112_s26, %s5108_s25 }
   0x6   : > { %p177_p1 = scmp.eq.s32.totalorder %s176_s9, 0  ;;  %p190_p2 = scmp.eq.s32.totalorder %s5184_s28, 1 }
   0x7   : > { %p195_p3 = scmp.ne.s32.totalorder %s5108_s25, %s5104_s24  ;;  %p196_p4 = scmp.eq.s32.totalorder %s3383_s29, 1 }
   0x8   : > { %s5199_s10 = scalar_select %p177_p1, %s5112_s26, %s179_s8  }
   0x9   : > { %p5201_p5 = por %p190_p2, %p189_p0  ;;  %p5205_p6 = por %p196_p4, %p195_p3 }
   0xa   : > { %p3386_p7 = scmp.ge.s32.totalorder %s5116_s27, 1  ;;  %p240_p8 = scmp.lt.s32.totalorder %s5116_s27, 3 }
   0xc   : > { %p241_p9 = pnand %p3386_p7, %p240_p8 }
   0xd   : > { %v298_v0 = vld [vmem:[%s6264_s1] sm:$0xff] (!%p241_p9)  ;;  %v299_v1 = vld [vmem:[%s6264_s1 + $0x8] sm:$0xff] (!%p241_p9)  ;;  %v300_v2 = vld [vmem:[%s6264_s1 + $0x10] sm:$0xff] (!%p241_p9)  ;;  %p271_p10 = scmp.lt.s32.totalorder (!%p241_p9), %s5184_s28, 1  ;;  %vm311_vm0 = vcmask (!%p241_p9), 261120   ;;  %v277_v50 = vlaneseq (!%p241_p9)  ;;  %v5118_v56 = vmov (!%p241_p9), 0.0  }
   0xe   : > { %244 = sbr.rel (%p241_p9) target bundleno = 1909 (0x775), region = 48  ;;  %v4551_v3 = vpack.c.bf16 (!%p241_p9), %v299_v1, %v298_v0  ;;  %v301_v4 = vld [vmem:[%s6264_s1 + $0x18] sm:$0xff] (!%p241_p9)  ;;  %v3401_v6 = vld [vmem:[%s6264_s1 + $0x40] sm:$0xff] (!%p241_p9)  ;;  %v3402_v7 = vld [vmem:[%s6264_s1 + $0x48] sm:$0xff] (!%p241_p9)  ;;  %vm836_vm2 = vcmask (!%p241_p9), 228352   ;;  %vm843_vm6 = vcmask (!%p241_p9), 1043456  }
   0xf   : > { %v4555_v5 = vpack.c.bf16 (!%p241_p9), %v301_v4, %v300_v2  ;;  %v3389_v8 = vld [vmem:[%s6264_s1 + $0x20] sm:$0xff] (!%p241_p9)  ;;  %v3390_v9 = vld [vmem:[%s6264_s1 + $0x28] sm:$0xff] (!%p241_p9)  ;;  %v4559_v10 = vpack.c.bf16 (!%p241_p9), %v3402_v7, %v3401_v6  ;;  %v3391_v12 = vld [vmem:[%s6264_s1 + $0x30] sm:$0xff] (!%p241_p9)  ;;  %v278_v51 = vshrl.u32 (!%p241_p9), %v277_v50, 7  ;;  %v281_v53 = vand.u32 (!%p241_p9), 127, %v277_v50  ;;  %s3661_s20 = sshll.u32 (!%p241_p9), %s5184_s28, 4 }
  0x10   : > { %4552 = vmatprep.subr.bf16.mxu0 (!%p241_p9), %v4551_v3  ;;  %v4543_v11 = vpack.c.bf16 (!%p241_p9), %v3390_v9, %v3389_v8  ;;  %v3392_v13 = vld [vmem:[%s6264_s1 + $0x38] sm:$0xff] (!%p241_p9)  ;;  %v3403_v15 = vld [vmem:[%s6264_s1 + $0x50] sm:$0xff] (!%p241_p9)  ;;  %v3409_v21 = vld [vmem:[%s6264_s1 + $0x60] sm:$0xff] (!%p241_p9)  ;;  %vm5119_vm7 = vmmov (!%p241_p9), 1   ;;  %vm1660_vm9 = vcmask (!%p241_p9), 1046528   ;;  %vm1841_vm10 = vcmask (!%p241_p9), 1045504   ;;  %s6221_s8 = scalar_lea.hbm (!%p241_p9), %s6270_s7, %s3661_s20 }
  0x11   : > { %4554 = vmatpush3.bf16.msra.mxu0 (!%p241_p9), %v4551_v3  ;;  %v3404_v16 = vld [vmem:[%s6264_s1 + $0x58] sm:$0xff] (!%p241_p9)  ;;  %v4547_v17 = vpack.c.bf16 (!%p241_p9), %v3392_v13, %v3391_v12  ;;  %v3410_v22 = vld [vmem:[%s6264_s1 + $0x68] sm:$0xff] (!%p241_p9)  ;;  %v3411_v27 = vld [vmem:[%s6264_s1 + $0x70] sm:$0xff] (!%p241_p9)  ;;  %v279_v52 = vadd.s32 (!%p241_p9), 8, %v278_v51  ;;  %v282_v54 = vmul.u32 (!%p241_p9), 2, %v278_v51  ;;  %vm1664_vm11 = vcmask (!%p241_p9), 687104  }
  0x12   : > { %4556 = vmatprep.subr.bf16.mxu0 (!%p241_p9), %v4555_v5  ;;  %4544 = vmatprep.subr.bf16.mxu1 (!%p241_p9), %v4543_v11  ;;  %v4563_v20 = vpack.c.bf16 (!%p241_p9), %v3404_v16, %v3403_v15  ;;  %v4567_v26 = vpack.c.bf16 (!%p241_p9), %v3410_v22, %v3409_v21  ;;  %v3412_v28 = vld [vmem:[%s6264_s1 + $0x78] sm:$0xff] (!%p241_p9)  ;;  %v3417_v34 = vld [vmem:[%s6264_s1 + $0x80] sm:$0xff] (!%p241_p9)  ;;  %v3418_v35 = vld [vmem:[%s6264_s1 + $0x88] sm:$0xff] (!%p241_p9)  ;;  %vm1941_vm12 = vcmask (!%p241_p9), 1044480   ;;  %vm5121_vm13 = vmmov (!%p241_p9), 0  }
  0x13   : > { %4546 = vmatpush3.bf16.msra.mxu1 (!%p241_p9), %v4543_v11  ;;  %v4571_v33 = vpack.c.bf16 (!%p241_p9), %v3412_v28, %v3411_v27  ;;  %v4575_v39 = vpack.c.bf16 (!%p241_p9), %v3418_v35, %v3417_v34  ;;  %v3419_v40 = vld [vmem:[%s6264_s1 + $0x90] sm:$0xff] (!%p241_p9)  ;;  %v3420_v41 = vld [vmem:[%s6264_s1 + $0x98] sm:$0xff] (!%p241_p9)  ;;  %v283_v55 = vmul.u32 (!%p241_p9), 2, %v279_v52  ;;  %vm284_vm1 = vcmp.eq.s32.totalorder (!%p241_p9), %v281_v53, %v282_v54  ;;  %vm5391_vm8 = vmpackc.low (!%p241_p9), %vm843_vm6, %vm5119_vm7 }
  0x14   : > { %4548 = vmatprep.subr.bf16.mxu1 (!%p241_p9), %v4547_v17  ;;  %v4579_v44 = vpack.c.bf16 (!%p241_p9), %v3420_v41, %v3419_v40  ;;  %v5379_v57 = vsel (!%p241_p9), %vm284_vm1, 1.0, %v5118_v56  ;;  %v288_v59 = vadd.s32 (!%p241_p9), 1, %v282_v54  ;;  %v3435_v15 = vld [vmem:[%s6264_s1 + $0xc0] sm:$0xff] (!%p241_p9)  ;;  %v3436_v16 = vld [vmem:[%s6264_s1 + $0xc8] sm:$0xff] (!%p241_p9)  ;;  %v3438_v21 = vld [vmem:[%s6264_s1 + $0xd8] sm:$0xff] (!%p241_p9)  ;;  %vm2131_vm14 = vcmask (!%p241_p9), 1041408  }
  0x15   : > { %s272_s21 = scalar_select %p271_p10, %s5184_s28, 1  ;;  %4558 = vmatpush3.bf16.msra.mxu0 %v4555_v5  ;;  %vm5381_vm3 = vcmp.eq.s32.totalorder %v281_v53, %v283_v55  ;;  %v289_v60 = vadd.s32 1, %v283_v55  ;;  %v3431_v27 = vld [vmem:[%s6264_s1 + $0xa0] sm:$0xff]  ;;  %v3432_v28 = vld [vmem:[%s6264_s1 + $0xa8] sm:$0xff]  ;;  %v3433_v34 = vld [vmem:[%s6264_s1 + $0xb0] sm:$0xff]  ;;  %vm2898_vm1 = vcmask 654336  }
  0x16   : > { %4560 = vmatprep.subr.bf16.mxu0 %v4559_v10  ;;  %vm290_vm4 = vcmp.eq.s32.totalorder %v281_v53, %v288_v59  ;;  %v5402_v12 = vsel %vm5381_vm3, 1.0, %v5118_v56  ;;  %v3434_v35 = vld [vmem:[%s6264_s1 + $0xb8] sm:$0xff]  ;;  %v3447_v40 = vld [vmem:[%s6264_s1 + $0xe0] sm:$0xff]  ;;  %v3456_v51 = vld [vmem:[%s6264_s1 + $0x108] sm:$0xff]  ;;  %s5122_s28 = smov [#allocation2]  }
  0x17   : > { %s3664_s9 = sshll.u32 %s272_s21, 5  ;;  %4550 = vmatpush3.bf16.msra.mxu1 %v4547_v17  ;;  %vm291_vm5 = vcmp.eq.s32.totalorder %v281_v53, %v289_v60  ;;  %v5406_v13 = vsel %vm290_vm4, 1.0, %v5118_v56  ;;  %v4603_v17 = vpack.c.bf16 %v3436_v16, %v3435_v15  ;;  %v3450_v50 = vld [vmem:[%s6264_s1 + $0xf8] sm:$0xff]  ;;  %v3464_v53 = vld [vmem:[%s6264_s1 + $0x128] sm:$0xff]  ;;  %v3485_v16 = vld [vmem:[%s6266_s3 + $0x90] sm:$0xff]  ;;  %s5058_s14 = sshll.u32 %s5122_s28, 4  ;;  %s5059_s14 = int_to_ptr.vmem [resolvable:$false] %s5058_s14 }
  0x18   : > { %s5240_s19 = scalar_lea.vmem %s6263_s0, %s3664_s9  ;;  %v5430_v22 = vsel %vm291_vm5, 1.0, %v5118_v56  ;;  %v3458_v52 = vld [vmem:[%s6264_s1 + $0x118] sm:$0xff]  ;;  %v3484_v15 = vld [vmem:[%s6266_s3 + $0x88] sm:$0xff]  ;;  %vm5792_vm15 = vmpackc.low %vm2131_vm14, %vm5119_vm7  ;;  %s5060_s15 = scalar_lea.vmem %s5059_s14, 32 }
  0x19   : > { %v5249_v14 = vld [vmem:[%s5240_s19] sm:$0xff]  ;;  %v5260_v18 = vld [vmem:[%s5240_s19 + $0x8] sm:$0xff]  ;;  %v5263_v19 = vld [vmem:[%s5240_s19 + $0x10] sm:$0xff] }
  0x1a   : > { %3988 = vmatprep.mubr.msk.f32.mxu0 %vm311_vm0, %v5249_v14  ;;  %v5272_v23 = vld [vmem:[%s5240_s19 + $0x1] sm:$0xff]  ;;  %v5281_v24 = vld [vmem:[%s5240_s19 + $0x18] sm:$0xf]  ;;  %v5293_v29 = vld [vmem:[%s5240_s19 + $0x9] sm:$0xff] }
  0x1b   : > { %3989 = vmatmul.mubr.msk.f32.vlgmr.msra.gmra.mrb[0].mxu0 %vm311_vm0, %v5260_v18  ;;  %3974 = vmatprep.mubr.msk.f32.mxu1 %vm311_vm0, %v5272_v23  ;;  %v5284_v25 = vld [vmem:[%s5240_s19 + $0x2] sm:$0xff]  ;;  %v5298_v30 = vld [vmem:[%s5240_s19 + $0x11] sm:$0xff]  ;;  %v5319_v36 = vld [vmem:[%s5240_s19 + $0x19] sm:$0xf] }
  0x1c   : > { %4562 = vmatpush3.bf16.msra.mxu0 %v4559_v10  ;;  %3991 = vmatprep.mubr.msk.f32.mxu0 %vm311_vm0, %v5263_v19  ;;  %v5303_v31 = vld [vmem:[%s5240_s19 + $0xa] sm:$0xff]  ;;  %v5306_v32 = vld [vmem:[%s5240_s19 + $0x12] sm:$0xff]  ;;  %v5326_v37 = vld [vmem:[%s5240_s19 + $0x1a] sm:$0xf] }
  0x1d   : > { %4564 = vmatprep.subr.bf16.mxu0 %v4563_v20  ;;  %3975 = vmatmul.mubr.msk.f32.vlgmr.msra.gmra.mrb[0].mxu1 %vm311_vm0, %v5293_v29  ;;  %v5329_v38 = vld [vmem:[%s5240_s19 + $0x3] sm:$0xff]  ;;  %v5344_v42 = vld [vmem:[%s5240_s19 + $0xb] sm:$0xff]  ;;  %v5347_v43 = vld [vmem:[%s5240_s19 + $0x13] sm:$0xff] }
  0x1e   : > { %3977 = vmatprep.mubr.msk.f32.mxu1 %vm311_vm0, %v5298_v30  ;;  %v5354_v45 = vld [vmem:[%s5240_s19 + $0x1b] sm:$0xf]  ;;  %v5357_v46 = vld [vmem:[%s5240_s19 + $0x4] sm:$0xff]  ;;  %v5364_v47 = vld [vmem:[%s5240_s19 + $0xc] sm:$0xff] }
  0x1f   : > { %3992 = vmatmul.mubr.msk.f32.gmra.mrb[2].mxu0 %vm311_vm0, %v5281_v24  ;;  %v5367_v48 = vld [vmem:[%s5240_s19 + $0x14] sm:$0xff]  ;;  %v5374_v49 = vld [vmem:[%s5240_s19 + $0x1c] sm:$0xf]  ;;  %s269_s19 = sand.u32 1, %s5108_s25  }
  0x20   : > { %4566 = vmatpush3.bf16.msra.mxu0 %v4563_v20  ;;  %4002 = vmatprep.mubr.msk.f32.mxu0 %vm311_vm0, %v5284_v25  ;;  %v3437_v20 = vld [vmem:[%s6264_s1 + $0xd0] sm:$0xff]  ;;  %v3466_v54 = vld [vmem:[%s6264_s1 + $0x138] sm:$0xff]  ;;  %s270_s21 = scalar_lea.vmem [#allocation2], %s269_s19  ;;  %s3316_s9 = scalar_lea.sflag [#allocation3], %s269_s19 }
  0x21   : > { %4568 = vmatprep.subr.bf16.mxu0 %v4567_v26  ;;  %3978 = vmatmul.mubr.msk.f32.gmra.mrb[2].mxu1 %vm311_vm0, %v5319_v36  ;;  %v3499_v10 = vld [vmem:[%s6266_s3 + $0xd0] sm:$0xff]  ;;  %s3328_s22 = sshll.u32 %s270_s21, 4  ;;  %s6223_s22 = int_to_ptr.vmem [resolvable:$true] %s3328_s22 }
  0x22   : > { %4044 = vmatprep.mubr.msk.f32.mxu1 %vm836_vm2, %v5379_v57  ;;  %s5054_s13 = scalar_lea.vmem %s6223_s22, 16  ;;  %p5061_p0 = scmp.lt.s32.totalorder %s6223_s22, %s5059_s14 }
  0x23   : > { %4003 = vmatmul.mubr.msk.f32.vlgmr.msra.gmra.mrb[0].mxu0 %vm311_vm0, %v5303_v31  ;;  %p5055_p11 = scmp.ne.s32.totalorder %s6223_s22, %s5054_s13  ;;  %p5062_p1 = scmp.lt.s32.totalorder %s5060_s15, %s5054_s13 }
  0x24   : > { %4570 = vmatpush3.bf16.msra.mxu0 %v4567_v26  ;;  %4005 = vmatprep.mubr.msk.f32.mxu0 %vm311_vm0, %v5306_v32  ;;  %v4607_v26 = vpack.c.bf16 %v3438_v21, %v3437_v20  ;;  %v4675_v20 = vpack.c.bf16 %v3485_v16, %v3484_v15  ;;  %v3502_v21 = vld [vmem:[%s6266_s3 + $0xe8] sm:$0xff] }
  0x25   : > { %4572 = vmatprep.subr.bf16.mxu0 %v4571_v33  ;;  %v1644_v15 = vld [vmem:[%s6266_s3 + $0x48] sm:$0xff]  ;;  %p5056_p12 = pnand %p5055_p11, %p5201_p5  ;;  %p5063_p2 = por %p5062_p1, %p5061_p0 }
  0x26   : > { %v3517_v16 = vld [vmem:[%s6266_s3 + $0x148] sm:$0xff] }
  0x27   : > { %4006 = vmatmul.mubr.msk.f32.gmra.mrb[2].mxu0 %vm311_vm0, %v5326_v37  ;;  %p5057_p13 = pneg %p5056_p12 }
  0x28   : > { %4574 = vmatpush3.bf16.msra.mxu0 %v4571_v33  ;;  %4016 = vmatprep.mubr.msk.f32.mxu0 %vm311_vm0, %v5329_v38  ;;  %v4611_v33 = vpack.c.bf16 %v3432_v28, %v3431_v27  ;;  %v3487_v27 = vld [vmem:[%s6266_s3 + $0xa0] sm:$0xff]  ;;  %v3503_v28 = vld [vmem:[%s6266_s3 + $0xf0] sm:$0xff] }
  0x29   : > { %4576 = vmatprep.subr.bf16.mxu0 %v4575_v39  ;;  %p5064_p3 = pnand %p5063_p2, %p5057_p13 }
  0x2b   : > { %4017 = vmatmul.mubr.msk.f32.vlgmr.msra.gmra.mrb[0].mxu0 %vm311_vm0, %v5344_v42 }
  0x2c   : > { %4578 = vmatpush3.bf16.msra.mxu0 %v4575_v39  ;;  %4019 = vmatprep.mubr.msk.f32.mxu0 %vm311_vm0, %v5347_v43  ;;  %v4615_v39 = vpack.c.bf16 %v3434_v35, %v3433_v34  ;;  %v3504_v34 = vld [vmem:[%s6266_s3 + $0xf8] sm:$0xff] }
  0x2d   : > { %4580 = vmatprep.subr.bf16.mxu0 %v4579_v44  ;;  %v4719_v35 = vpack.c.bf16 %v3504_v34, %v3503_v28  ;;  %v3524_v28 = vld [vmem:[%s6266_s3 + $0x168] sm:$0xff] }
  0x2f   : > { %4020 = vmatmul.mubr.msk.f32.gmra.mrb[2].mxu0 %vm311_vm0, %v5354_v45 }
  0x30   : > { %4582 = vmatpush3.bf16.msra.mxu0 %v4579_v44  ;;  %4030 = vmatprep.mubr.msk.f32.mxu0 %vm311_vm0, %v5357_v46  ;;  %v3449_v44 = vld [vmem:[%s6264_s1 + $0xf0] sm:$0xff] }
  0x33   : > { %4031 = vmatmul.mubr.msk.f32.vlgmr.msra.gmra.mrb[0].mxu0 %vm311_vm0, %v5364_v47 }
  0x34   : > { %4033 = vmatprep.mubr.msk.f32.mxu0 %vm311_vm0, %v5367_v48 }
  0x37   : > { %4034 = vmatmul.mubr.msk.f32.gmra.mrb[2].mxu0 %vm311_vm0, %v5374_v49 }
  0x38   : > { %4136 = vmatprep.mubr.msk.f32.mxu0 %vm836_vm2, %v5379_v57 }
  0xf0   : > { %v3976_v61 = vpop.f32.mrb[0].mxu1 }
  0xf1   : > { %v390_v62 = vpop.f32.mrb[1].mxu1 }
  0xf4   : > { %v3979_v63 = vpop.f32.mrb[2].mxu1 }
  0xf5   : > { %v400_v0 = vpop.f32.mrb[3].mxu1 }
 0x106   : > { %v4032_v1 = vpop.f32.mrb[0].mxu0 }
 0x107   : > { %v4954_v2 = vadd.f32 %v4032_v1, %v3976_v61  ;;  %v813_v3 = vpop.f32.mrb[1].mxu0  ;;  %v3480_v1 = vld [vmem:[%s6266_s3 + $0x68] sm:$0xff] }
 0x108   : > { %v4955_v4 = vadd.f32 %v813_v3, %v390_v62  ;;  %v3495_v62 = vld [vmem:[%s6266_s3 + $0xb0] sm:$0xff]  ;;  %v3497_v3 = vld [vmem:[%s6266_s3 + $0xc0] sm:$0xff] }
 0x10a   : > { %v4583_v5 = vpack.c.bf16 %v4954_v2, %v4955_v4  ;;  %v4035_v6 = vpop.f32.mrb[2].mxu0  ;;  %v3481_v2 = vld [vmem:[%s6266_s3 + $0x70] sm:$0xff] }
 0x10b   : > { %v4956_v7 = vadd.f32 %v4035_v6, %v3979_v63  ;;  %v823_v8 = vpop.f32.mrb[3].mxu0  ;;  %v3496_v63 = vld [vmem:[%s6266_s3 + $0xb8] sm:$0xff]  ;;  %v4667_v4 = vpack.c.bf16 %v3481_v2, %v3480_v1  ;;  %v3513_v1 = vld [vmem:[%s6266_s3 + $0x128] sm:$0xff]  ;;  %v3514_v2 = vld [vmem:[%s6266_s3 + $0x130] sm:$0xff] }
 0x10c   : > { %v4957_v9 = vadd.f32 %v823_v8, %v400_v0  ;;  %4584 = vmatprep.subr.bf16.mxu1 %v4583_v5  ;;  %v4703_v0 = vpack.c.bf16 %v3496_v63, %v3495_v62  ;;  %v3482_v6 = vld [vmem:[%s6266_s3 + $0x78] sm:$0xff] }
 0x10d   : > { %4586 = vmatpush3.bf16.msra.mxu1 %v4583_v5 }
 0x10e   : > { %v4587_v11 = vpack.c.bf16 %v4956_v7, %v4957_v9  ;;  %v3483_v7 = vld [vmem:[%s6266_s3 + $0x80] sm:$0xff] }
 0x10f   : > { %v4671_v9 = vpack.c.bf16 %v3483_v7, %v3482_v6  ;;  %v1641_v6 = vld [vmem:[%s6266_s3 + $0x30] sm:$0xff]  ;;  %v1642_v7 = vld [vmem:[%s6266_s3 + $0x38] sm:$0xff] }
 0x110   : > { %4589 = vmatprep.subr.msk.bf16.mxu1 %vm5391_vm8, %v4587_v11 }
 0x111   : > { %4592 = vmatpush3.bf16.msk.msra.mxu1 %vm5391_vm8, %v4587_v11 }
 0x112   : > { %4594 = vmatprep.subr.bf16.mxu1 %v4583_v5 }
 0x114   : > { %4045 = vmatmul.mubr.msk.f32.vlgmr.msra.gmra.mrb[4].mxu1 %vm836_vm2, %v5402_v12 }
 0x115   : > { %4596 = vmatpush3.bf16.msra.mxu1 %v4583_v5  ;;  %4055 = vmatprep.mubr.msk.f32.mxu1 %vm836_vm2, %v5406_v13  ;;  %v3498_v5 = vld [vmem:[%s6266_s3 + $0xc8] sm:$0xff] }
 0x116   : > { %4599 = vmatprep.subr.msk.bf16.mxu1 %vm5391_vm8, %v4587_v11  ;;  %v4707_v8 = vpack.c.bf16 %v3498_v5, %v3497_v3  ;;  %v4731_v5 = vpack.c.bf16 %v3514_v2, %v3513_v1  ;;  %v3557_v1 = vld [vmem:[%s6266_s3 + $0x238] sm:$0xff] }
 0x119   : > { %4602 = vmatpush3.bf16.msk.msra.mxu1 %vm5391_vm8, %v4587_v11  ;;  %v3500_v11 = vld [vmem:[%s6266_s3 + $0xd8] sm:$0xff] }
 0x11a   : > { %4604 = vmatprep.subr.bf16.mxu1 %v4603_v17 }
 0x11c   : > { %4056 = vmatmul.mubr.msk.f32.vlgmr.msra.gmra.mrb[6].mxu1 %vm836_vm2, %v5430_v22 }
 0x11d   : > { %4606 = vmatpush3.bf16.msra.mxu1 %v4603_v17  ;;  %4066 = vmatprep.mubr.msk.f32.mxu1 %vm311_vm0, %v5272_v23  ;;  %v3448_v23 = vld [vmem:[%s6264_s1 + $0xe8] sm:$0xff]  ;;  %v3501_v17 = vld [vmem:[%s6266_s3 + $0xe0] sm:$0xff] }
 0x11e   : > { %4608 = vmatprep.subr.bf16.mxu1 %v4607_v26  ;;  %v4619_v41 = vpack.c.bf16 %v3448_v23, %v3447_v40  ;;  %v3505_v40 = vld [vmem:[%s6266_s3 + $0x100] sm:$0xf] }
 0x11f   : > { %v1635_v23 = vld [vmem:[%s6266_s3] sm:$0xff] }
 0x121   : > { %4610 = vmatpush3.bf16.msra.mxu1 %v4607_v26  ;;  %v3486_v26 = vld [vmem:[%s6266_s3 + $0x98] sm:$0xff] }
 0x122   : > { %4612 = vmatprep.subr.bf16.mxu1 %v4611_v33 }
 0x124   : > { %4067 = vmatmul.mubr.msk.f32.vlgmr.msra.gmra.mrb[8].mxu1 %vm311_vm0, %v5293_v29  ;;  %v4623_v29 = vpack.c.bf16 %v3450_v50, %v3449_v44  ;;  %v3509_v44 = vld [vmem:[%s6266_s3 + $0x108] sm:$0xff] }
 0x125   : > { %4614 = vmatpush3.bf16.msra.mxu1 %v4611_v33  ;;  %4069 = vmatprep.mubr.msk.f32.mxu1 %vm311_vm0, %v5298_v30  ;;  %v3455_v30 = vld [vmem:[%s6264_s1 + $0x100] sm:$0xff]  ;;  %v4679_v33 = vpack.c.bf16 %v3487_v27, %v3486_v26  ;;  %v3519_v26 = vld [vmem:[%s6266_s3 + $0x158] sm:$0xf] }
 0x126   : > { %4616 = vmatprep.subr.bf16.mxu1 %v4615_v39  ;;  %v3523_v27 = vld [vmem:[%s6266_s3 + $0x160] sm:$0xff] }
 0x128   : > { %4070 = vmatmul.mubr.msk.f32.gmra.mrb[10].mxu1 %vm311_vm0, %v5319_v36  ;;  %v4627_v36 = vpack.c.bf16 %v3456_v51, %v3455_v30 }
 0x129   : > { %4618 = vmatpush3.bf16.msra.mxu1 %v4615_v39  ;;  %4080 = vmatprep.mubr.msk.f32.mxu1 %vm311_vm0, %v5249_v14  ;;  %v3457_v14 = vld [vmem:[%s6264_s1 + $0x110] sm:$0xff]  ;;  %v3488_v39 = vld [vmem:[%s6266_s3 + $0xa8] sm:$0xf] }
 0x12a   : > { %4620 = vmatprep.subr.bf16.mxu1 %v4619_v41 }
 0x12c   : > { %4081 = vmatmul.mubr.msk.f32.vlgmr.msra.gmra.mrb[8].mxu1 %vm311_vm0, %v5260_v18  ;;  %v4631_v18 = vpack.c.bf16 %v3458_v52, %v3457_v14 }
 0x12d   : > { %4622 = vmatpush3.bf16.msra.mxu1 %v4619_v41  ;;  %4083 = vmatprep.mubr.msk.f32.mxu1 %vm311_vm0, %v5263_v19  ;;  %v3463_v19 = vld [vmem:[%s6264_s1 + $0x120] sm:$0xff]  ;;  %v1636_v41 = vld [vmem:[%s6266_s3 + $0x8] sm:$0xff] }
 0x12e   : > { %4624 = vmatprep.subr.bf16.mxu1 %v4623_v29  ;;  %v4683_v50 = vpack.c.bf16 %v1636_v41, %v1635_v23 }
 0x130   : > { %4084 = vmatmul.mubr.msk.f32.gmra.mrb[10].mxu1 %vm311_vm0, %v5281_v24  ;;  %v4635_v24 = vpack.c.bf16 %v3464_v53, %v3463_v19  ;;  %v3477_v19 = vld [vmem:[%s6265_s2] ss:$0 sm:$0xff] }
 0x131   : > { %4626 = vmatpush3.bf16.msra.mxu1 %v4623_v29  ;;  %4094 = vmatprep.mubr.msk.f32.mxu1 %vm311_vm0, %v5284_v25  ;;  %v3465_v25 = vld [vmem:[%s6264_s1 + $0x130] sm:$0xff] }
 0x132   : > { %4628 = vmatprep.subr.bf16.mxu1 %v4627_v36  ;;  %v3510_v29 = vld [vmem:[%s6266_s3 + $0x110] sm:$0xff] }
 0x133   : > { %v4723_v30 = vpack.c.bf16 %v3510_v29, %v3509_v44  ;;  %v3527_v44 = vld [vmem:[%s6266_s3 + $0x180] sm:$0xff] }
 0x134   : > { %4095 = vmatmul.mubr.msk.f32.vlgmr.msra.gmra.mrb[8].mxu1 %vm311_vm0, %v5303_v31  ;;  %v4639_v31 = vpack.c.bf16 %v3466_v54, %v3465_v25 }
 0x135   : > { %4630 = vmatpush3.bf16.msra.mxu1 %v4627_v36  ;;  %4097 = vmatprep.mubr.msk.f32.mxu1 %vm311_vm0, %v5306_v32  ;;  %v3478_v32 = vld [vmem:[%s6266_s3 + $0x58] sm:$0xff] }
 0x136   : > { %4632 = vmatprep.subr.bf16.mxu1 %v4631_v18 }
 0x138   : > { %4098 = vmatmul.mubr.msk.f32.gmra.mrb[10].mxu1 %vm311_vm0, %v5326_v37  ;;  %v3479_v37 = vld [vmem:[%s6266_s3 + $0x60] sm:$0xff] }
 0x139   : > { %4634 = vmatpush3.bf16.msra.mxu1 %v4631_v18  ;;  %4108 = vmatprep.mubr.msk.f32.mxu1 %vm311_vm0, %v5329_v38  ;;  %v4663_v38 = vpack.c.bf16 %v3479_v37, %v3478_v32 }
 0x13a   : > { %4636 = vmatprep.subr.bf16.mxu1 %v4635_v24 }
 0x13c   : > { %4109 = vmatmul.mubr.msk.f32.vlgmr.msra.gmra.mrb[8].mxu1 %vm311_vm0, %v5344_v42 }
 0x13d   : > { %4638 = vmatpush3.bf16.msra.mxu1 %v4635_v24  ;;  %4111 = vmatprep.mubr.msk.f32.mxu1 %vm311_vm0, %v5347_v43 }
 0x13e   : > { %4640 = vmatprep.subr.bf16.mxu1 %v4639_v31 }
 0x140   : > { %4112 = vmatmul.mubr.msk.f32.gmra.mrb[10].mxu1 %vm311_vm0, %v5354_v45 }
 0x141   : > { %4642 = vmatpush3.bf16.msra.mxu1 %v4639_v31  ;;  %4122 = vmatprep.mubr.msk.f32.mxu1 %vm311_vm0, %v5357_v46 }
 0x142   : > { %4664 = vmatprep.subr.bf16.mxu1 %v4663_v38 }
 0x144   : > { %4123 = vmatmul.mubr.msk.f32.vlgmr.msra.gmra.mrb[8].mxu1 %vm311_vm0, %v5364_v47 }
 0x145   : > { %4125 = vmatprep.mubr.msk.f32.mxu1 %vm311_vm0, %v5367_v48  ;;  %4666 = vmatpush3.bf16.msra.mxu1 %v4663_v38 }
 0x146   : > { %4668 = vmatprep.subr.bf16.mxu1 %v4667_v4 }
 0x148   : > { %4126 = vmatmul.mubr.msk.f32.gmra.mrb[10].mxu1 %vm311_vm0, %v5374_v49  ;;  %vm2128_vm0 = vcmask 80896  }
 0x149   : > { %4670 = vmatpush3.bf16.msra.mxu1 %v4667_v4 }
 0x14a   : > { %4672 = vmatprep.subr.bf16.mxu1 %v4671_v9 }
 0x14d   : > { %4674 = vmatpush3.bf16.msra.mxu1 %v4671_v9  ;;  %v3516_v9 = vld [vmem:[%s6266_s3 + $0x140] sm:$0xff] }
 0x14e   : > { %4676 = vmatprep.subr.bf16.mxu1 %v4675_v20 }
 0x151   : > { %4678 = vmatpush3.bf16.msra.mxu1 %v4675_v20 }
 0x152   : > { %4680 = vmatprep.subr.bf16.mxu1 %v4679_v33 }
 0x155   : > { %4682 = vmatpush3.bf16.msra.mxu1 %v4679_v33 }
 0x156   : > { %4170 = vmatprep.subr.msk.mxu1 %vm843_vm6, %v3488_v39 }
 0x159   : > { %4171 = vmatpush3.msk.msra.mxu1 %vm843_vm6, %v3488_v39  ;;  %v3526_v39 = vld [vmem:[%s6266_s3 + $0x178] sm:$0xff] }
 0x15a   : > { %4684 = vmatprep.subr.bf16.mxu1 %v4683_v50 }
 0x1e7   : > { %v5528_v42 = vpop.f32.mrb[4].mxu1 }
 0x1e8   : > { %v5530_v43 = vpop.f32.mrb[5].mxu1 }
 0x1ef   : > { %v5532_v45 = vpop.f32.mrb[6].mxu1 }
 0x1f0   : > { %v1004_v46 = vmax.f32 %v5528_v42, %v5532_v45  ;;  %v5536_v47 = vpop.f32.mrb[7].mxu1  ;;  %v1637_v42 = vld [vmem:[%s6266_s3 + $0x10] sm:$0xff] }
 0x1f1   : > { %v1003_v48 = vmax.f32 %v5530_v43, %v5536_v47  ;;  %v3511_v47 = vld [vmem:[%s6266_s3 + $0x118] sm:$0xff] }
 0x217   : > { %v4124_v49 = vpop.f32.mrb[8].mxu1 }
 0x218   : > { %v1444_v55 = vpop.f32.mrb[9].mxu1 }
 0x219   : > { %v4643_v58 = vpack.c.bf16 %v4124_v49, %v1444_v55 }
 0x21b   : > { %v4127_v59 = vpop.f32.mrb[10].mxu1  ;;  %4644 = vmatprep.subr.bf16.mxu0 %v4643_v58 }
 0x21c   : > { %v1454_v60 = vpop.f32.mrb[11].mxu1  ;;  %4646 = vmatpush3.bf16.msra.mxu0 %v4643_v58 }
 0x21d   : > { %v4647_v61 = vpack.c.bf16 %v4127_v59, %v1454_v60 }
 0x21f   : > { %4649 = vmatprep.subr.msk.bf16.mxu0 %vm5391_vm8, %v4647_v61 }
 0x220   : > { %4652 = vmatpush3.bf16.msk.msra.mxu0 %vm5391_vm8, %v4647_v61 }
 0x221   : > { %4654 = vmatprep.subr.bf16.mxu0 %v4643_v58 }
 0x223   : > { %4137 = vmatmul.mubr.msk.f32.vlgmr.msra.gmra.mrb[4].mxu0 %vm836_vm2, %v5402_v12  ;;  %v4711_v12 = vpack.c.bf16 %v3500_v11, %v3499_v10  ;;  %v4695_v10 = vpack.c.bf16 %v1642_v7, %v1641_v6  ;;  %v3560_v7 = vld [vmem:[%s6266_s3 + $0x250] sm:$0xff] }
 0x224   : > { %4656 = vmatpush3.bf16.msra.mxu0 %v4643_v58  ;;  %4147 = vmatprep.mubr.msk.f32.mxu0 %vm836_vm2, %v5406_v13 }
 0x225   : > { %4659 = vmatprep.subr.msk.bf16.mxu0 %vm5391_vm8, %v4647_v61 }
 0x228   : > { %4662 = vmatpush3.bf16.msk.msra.mxu0 %vm5391_vm8, %v4647_v61  ;;  %v1639_v61 = vld [vmem:[%s6266_s3 + $0x20] sm:$0xff] }
 0x229   : > { %4704 = vmatprep.subr.bf16.mxu0 %v4703_v0 }
 0x22b   : > { %4148 = vmatmul.mubr.msk.f32.vlgmr.msra.gmra.mrb[6].mxu0 %vm836_vm2, %v5430_v22  ;;  %v4715_v22 = vpack.c.bf16 %v3502_v21, %v3501_v17  ;;  %v3518_v17 = vld [vmem:[%s6266_s3 + $0x150] sm:$0xff]  ;;  %vm3313_vm2 = vcmask 73728  }
 0x22c   : > { %4706 = vmatpush3.bf16.msra.mxu0 %v4703_v0  ;;  %v1640_v0 = vld [vmem:[%s6266_s3 + $0x28] sm:$0xff]  ;;  %v4739_v21 = vpack.c.bf16 %v3518_v17, %v3517_v16 }
 0x22d   : > { %4708 = vmatprep.subr.bf16.mxu0 %v4707_v8  ;;  %v4691_v4 = vpack.c.bf16 %v1640_v0, %v1639_v61  ;;  %v3554_v61 = vld [vmem:[%s6266_s3 + $0x220] sm:$0xff]  ;;  %v3556_v0 = vld [vmem:[%s6266_s3 + $0x230] sm:$0xff] }
 0x22e   : > { %v4779_v2 = vpack.c.bf16 %v3557_v1, %v3556_v0  ;;  %v3593_v1 = vld [vmem:[%s6266_s3 + $0x310] sm:$0xf] }
 0x230   : > { %4710 = vmatpush3.bf16.msra.mxu0 %v4707_v8  ;;  %v3515_v8 = vld [vmem:[%s6266_s3 + $0x138] sm:$0xff] }
 0x231   : > { %4712 = vmatprep.subr.bf16.mxu0 %v4711_v12  ;;  %v4735_v11 = vpack.c.bf16 %v3516_v9, %v3515_v8  ;;  %v3562_v9 = vld [vmem:[%s6266_s3 + $0x260] sm:$0xf] }
 0x234   : > { %4714 = vmatpush3.bf16.msra.mxu0 %v4711_v12  ;;  %v1643_v12 = vld [vmem:[%s6266_s3 + $0x40] sm:$0xff] }
 0x235   : > { %4716 = vmatprep.subr.bf16.mxu0 %v4715_v22  ;;  %v4699_v20 = vpack.c.bf16 %v1644_v15, %v1643_v12  ;;  %v3543_v12 = vld [vmem:[%s6266_s3 + $0x1c8] sm:$0xff]  ;;  %v3544_v15 = vld [vmem:[%s6266_s3 + $0x1d0] sm:$0xff] }
 0x236   : > { %v4795_v17 = vpack.c.bf16 %v3544_v15, %v3543_v12  ;;  %v3604_v12 = vld [vmem:[%s6266_s3 + $0x350] sm:$0xff] }
 0x238   : > { %4718 = vmatpush3.bf16.msra.mxu0 %v4715_v22  ;;  %v1645_v22 = vld [vmem:[%s6266_s3 + $0x50] sm:$0xf] }
 0x239   : > { %4720 = vmatprep.subr.bf16.mxu0 %v4719_v35 }
 0x23c   : > { %4722 = vmatpush3.bf16.msra.mxu0 %v4719_v35  ;;  %v3525_v35 = vld [vmem:[%s6266_s3 + $0x170] sm:$0xff] }
 0x23d   : > { %4220 = vmatprep.subr.msk.mxu0 %vm843_vm6, %v3505_v40  ;;  %v4747_v23 = vpack.c.bf16 %v3526_v39, %v3525_v35  ;;  %v3551_v35 = vld [vmem:[%s6266_s3 + $0x208] sm:$0xf] }
 0x23e   : > { %v3569_v39 = vld [vmem:[%s6266_s3 + $0x268] sm:$0xff] }
 0x240   : > { %4221 = vmatpush3.msk.msra.mxu0 %vm843_vm6, %v3505_v40  ;;  %v4743_v40 = vpack.c.bf16 %v3524_v28, %v3523_v27  ;;  %v3548_v27 = vld [vmem:[%s6266_s3 + $0x1f0] sm:$0xff] }
 0x241   : > { %4724 = vmatprep.subr.bf16.mxu0 %v4723_v30 }
 0x2f6   : > { %v4138_v51 = vpop.f32.mrb[4].mxu0 }
 0x2f7   : > { %v1536_v36 = vpop.f32.mrb[5].mxu0 }
 0x2fe   : > { %v4149_v14 = vpop.f32.mrb[6].mxu0 }
 0x2ff   : > { %v1621_v52 = vmax.f32 %v4138_v51, %v4149_v14  ;;  %v1611_v18 = vpop.f32.mrb[7].mxu0  ;;  %v3530_v51 = vld [vmem:[%s6266_s3 + $0x198] sm:$0xff]  ;;  %v3531_v14 = vld [vmem:[%s6266_s3 + $0x1a0] sm:$0xff] }
 0x300   : > { %v1620_v53 = vmax.f32 %v1536_v36, %v1611_v18 }
 0x301   : > { %v1623_v24 = vmax.f32 %v1004_v46, %v1621_v52  ;;  %v1638_v46 = vld [vmem:[%s6266_s3 + $0x18] sm:$0xff]  ;;  %v3532_v52 = vld [vmem:[%s6266_s3 + $0x1a8] sm:$0xff] }
 0x302   : > { %v1622_v25 = vmax.f32 %v1003_v48, %v1620_v53  ;;  %v3512_v48 = vld [vmem:[%s6266_s3 + $0x120] sm:$0xff]  ;;  %v4687_v62 = vpack.c.bf16 %v1638_v46, %v1637_v42  ;;  %v4759_v18 = vpack.c.bf16 %v3532_v52, %v3531_v14  ;;  %v5120_v53 = vmov 0.0|0.0   ;;  %v3575_v14 = vld [vmem:[%s6266_s3 + $0x298] sm:$0xff] }
 0x303   : > { %v1631_v54 = vadd.f32 %v3477_v19, %v1623_v24  ;;  %v4727_v63 = vpack.c.bf16 %v3512_v48, %v3511_v47  ;;  %v3552_v47 = vld [vmem:[%s6266_s3 + $0x210] sm:$0xff]  ;;  %v3553_v48 = vld [vmem:[%s6266_s3 + $0x218] sm:$0xff]  ;;  %v3576_v52 = vld [vmem:[%s6266_s3 + $0x2a0] sm:$0xff] }
 0x304   : > { %v1630_v31 = vadd.f32 %v3477_v19, %v1622_v25  ;;  %v3533_v19 = vld [vmem:[%s6266_s3 + $0x1b0] sm:$0xf] }
 0x305   : > { %v5639_v32 = vmax.f32 %v1631_v54, 0.0 }
 0x306   : > { %v5641_v37 = vmax.f32 %v1630_v31, 0.0 }
 0x307   : > { %v5644_v38 = vrot.slane %v5639_v32, 1  ;;  %v5647_v49 = vrot.slane %v5639_v32, 2  ;;  %v5665_v58 = vrot.slane %v5639_v32, 3  ;;  %v5740_v34 = vrot.slane %v5639_v32, 4 }
 0x308   : > { %v1661_v43 = vrot.slane %v5641_v37, 1  ;;  %v1842_v45 = vrot.slane %v5641_v37, 2  ;;  %v1942_v55 = vrot.slane %v5641_v37, 3  ;;  %v2041_v33 = vrot.slane %v5641_v37, 4 }
 0x30a   : > { %v5668_v59 = vsel %vm1660_vm9, %v1661_v43, %v5644_v38  ;;  %v5671_v60 = vsel %vm1841_vm10, %v1842_v45, %v5647_v49  ;;  %v5694_v3 = vsel %vm1941_vm12, %v1942_v55, %v5665_v58  ;;  %v5756_v41 = vsel %vm843_vm6, %v2041_v33, %v5740_v34  ;;  %v2892_v45 = vld [vmem:[%s6268_s5 + $0x20] sm:$0xff] }
 0x30b   : > { %4172 = vmatprep.mubr.msk.f32.mxu1 %vm1664_vm11, %v5668_v59  ;;  %4222 = vmatprep.mubr.msk.f32.mxu0 %vm1664_vm11, %v5671_v60  ;;  %v4771_v55 = vpack.c.bf16 %v3553_v48, %v3552_v47  ;;  %v3587_v47 = vld [vmem:[%s6266_s3 + $0x2e0] sm:$0xff]  ;;  %v3588_v48 = vld [vmem:[%s6266_s3 + $0x2e8] sm:$0xff] }
 0x30c   : > { %4173 = vmatmul.mubr.msk.f32.vlgmr.msra.gmra.mrb[12].mxu1 %vm1664_vm11, %v5644_v38  ;;  %4223 = vmatmul.mubr.msk.f32.vlgmr.msra.gmra.mrb[8].mxu0 %vm1664_vm11, %v5647_v49 }
 0x30d   : > { %4686 = vmatpush3.bf16.msra.mxu1 %v4683_v50  ;;  %4726 = vmatpush3.bf16.msra.mxu0 %v4723_v30  ;;  %v3528_v50 = vld [vmem:[%s6266_s3 + $0x188] sm:$0xff]  ;;  %v3529_v30 = vld [vmem:[%s6266_s3 + $0x190] sm:$0xff] }
 0x30e   : > { %4197 = vmatprep.mubr.msk.f32.mxu1 %vm1664_vm11, %v5641_v37  ;;  %4247 = vmatprep.mubr.msk.f32.mxu0 %vm1664_vm11, %v5694_v3  ;;  %v4751_v29 = vpack.c.bf16 %v3528_v50, %v3527_v44  ;;  %v4755_v36 = vpack.c.bf16 %v3530_v51, %v3529_v30  ;;  %v3572_v44 = vld [vmem:[%s6266_s3 + $0x280] sm:$0xff]  ;;  %v3573_v30 = vld [vmem:[%s6266_s3 + $0x288] sm:$0xff]  ;;  %v3574_v51 = vld [vmem:[%s6266_s3 + $0x290] sm:$0xff] }
 0x30f   : > { %4688 = vmatprep.subr.bf16.mxu1 %v4687_v62  ;;  %4728 = vmatprep.subr.bf16.mxu0 %v4727_v63 }
 0x311   : > { %4690 = vmatpush3.bf16.msra.mxu1 %v4687_v62  ;;  %4730 = vmatpush3.bf16.msra.mxu0 %v4727_v63  ;;  %v3555_v62 = vld [vmem:[%s6266_s3 + $0x228] sm:$0xff] }
 0x312   : > { %4692 = vmatprep.subr.bf16.mxu1 %v4691_v4  ;;  %4732 = vmatprep.subr.bf16.mxu0 %v4731_v5  ;;  %v4775_v63 = vpack.c.bf16 %v3555_v62, %v3554_v61  ;;  %v3589_v61 = vld [vmem:[%s6266_s3 + $0x2f0] sm:$0xff]  ;;  %v3590_v62 = vld [vmem:[%s6266_s3 + $0x2f8] sm:$0xff] }
 0x315   : > { %4694 = vmatpush3.bf16.msra.mxu1 %v4691_v4  ;;  %4734 = vmatpush3.bf16.msra.mxu0 %v4731_v5  ;;  %v3558_v4 = vld [vmem:[%s6266_s3 + $0x240] sm:$0xff]  ;;  %v3559_v5 = vld [vmem:[%s6266_s3 + $0x248] sm:$0xff] }
 0x316   : > { %4696 = vmatprep.subr.bf16.mxu1 %v4695_v10  ;;  %4736 = vmatprep.subr.bf16.mxu0 %v4735_v11  ;;  %v4783_v6 = vpack.c.bf16 %v3559_v5, %v3558_v4  ;;  %v3598_v4 = vld [vmem:[%s6266_s3 + $0x320] sm:$0xff]  ;;  %v3599_v5 = vld [vmem:[%s6266_s3 + $0x328] sm:$0xff] }
 0x319   : > { %4698 = vmatpush3.bf16.msra.mxu1 %v4695_v10  ;;  %4738 = vmatpush3.bf16.msra.mxu0 %v4735_v11  ;;  %v3541_v10 = vld [vmem:[%s6266_s3 + $0x1b8] sm:$0xff]  ;;  %v3542_v11 = vld [vmem:[%s6266_s3 + $0x1c0] sm:$0xff] }
 0x31a   : > { %4700 = vmatprep.subr.bf16.mxu1 %v4699_v20  ;;  %4740 = vmatprep.subr.bf16.mxu0 %v4739_v21  ;;  %v4791_v16 = vpack.c.bf16 %v3542_v11, %v3541_v10  ;;  %v3603_v11 = vld [vmem:[%s6266_s3 + $0x348] sm:$0xff] }
 0x31b   : > { %v4863_v15 = vpack.c.bf16 %v3604_v12, %v3603_v11  ;;  %v3633_v11 = vld [vmem:[%s6268_s5 + $0xc8] sm:$0xff] }
 0x31d   : > { %4702 = vmatpush3.bf16.msra.mxu1 %v4699_v20  ;;  %4742 = vmatpush3.bf16.msra.mxu0 %v4739_v21  ;;  %v3545_v20 = vld [vmem:[%s6266_s3 + $0x1d8] sm:$0xff]  ;;  %v3546_v21 = vld [vmem:[%s6266_s3 + $0x1e0] sm:$0xff] }
 0x31e   : > { %4195 = vmatprep.subr.msk.mxu1 %vm843_vm6, %v1645_v22  ;;  %4245 = vmatprep.subr.msk.mxu0 %vm843_vm6, %v3519_v26 }
 0x321   : > { %4196 = vmatpush3.msk.msra.mxu1 %vm843_vm6, %v1645_v22  ;;  %4246 = vmatpush3.msk.msra.mxu0 %vm843_vm6, %v3519_v26  ;;  %v4799_v22 = vpack.c.bf16 %v3546_v21, %v3545_v20  ;;  %v3547_v26 = vld [vmem:[%s6266_s3 + $0x1e8] sm:$0xff] }
 0x322   : > { %4198 = vmatmul.mubr.msk.f32.vlgmr.msra.gmra.mrb[12].mxu1 %vm1664_vm11, %v5639_v32  ;;  %4248 = vmatmul.mubr.msk.f32.vlgmr.msra.gmra.mrb[8].mxu0 %vm1664_vm11, %v5665_v58  ;;  %v4803_v28 = vpack.c.bf16 %v3548_v27, %v3547_v26 }
 0x323   : > { %4744 = vmatprep.subr.bf16.mxu0 %v4743_v40  ;;  %4272 = vmatprep.mubr.msk.f32.mxu0 %vm1664_vm11, %v5756_v41 }
 0x324   : > { %4746 = vmatpush3.bf16.msra.mxu0 %v4743_v40  ;;  %4763 = vmatprep.subr.bf16.mxu1 %v5120_v53  ;;  %v3570_v40 = vld [vmem:[%s6266_s3 + $0x270] sm:$0xff] }
 0x325   : > { %4748 = vmatprep.subr.bf16.mxu0 %v4747_v23  ;;  %4279 = vmatprep.mubr.msk.f32.mxu1 %vm5121_vm13, %v5118_v56  ;;  %v4811_v50 = vpack.c.bf16 %v3570_v40, %v3569_v39  ;;  %v2890_v39 = vld [vmem:[%s6268_s5 + $0x10] sm:$0xff]  ;;  %v2891_v40 = vld [vmem:[%s6268_s5 + $0x18] sm:$0xff] }
 0x328   : > { %4750 = vmatpush3.bf16.msra.mxu0 %v4747_v23  ;;  %v3571_v23 = vld [vmem:[%s6266_s3 + $0x278] sm:$0xff] }
 0x329   : > { %4752 = vmatprep.subr.bf16.mxu0 %v4751_v29 }
 0x32c   : > { %4754 = vmatpush3.bf16.msra.mxu0 %v4751_v29  ;;  %v4815_v29 = vpack.c.bf16 %v3572_v44, %v3571_v23  ;;  %v2893_v23 = vld [vmem:[%s6268_s5 + $0x28] sm:$0xff] }
 0x32d   : > { %4756 = vmatprep.subr.bf16.mxu0 %v4755_v36  ;;  %v4886_v44 = vpack.c.bf16 %v2893_v23, %v2892_v45  ;;  %v3647_v45 = vld [vmem:[%s6268_s5 + $0x130] sm:$0xff]  ;;  %v3648_v23 = vld [vmem:[%s6268_s5 + $0x138] sm:$0xff] }
 0x330   : > { %4758 = vmatpush3.bf16.msra.mxu0 %v4755_v36  ;;  %v4819_v36 = vpack.c.bf16 %v3574_v51, %v3573_v30  ;;  %v2896_v30 = vld [vmem:[%s6268_s5 + $0x40] sm:$0xff]  ;;  %v2897_v51 = vld [vmem:[%s6268_s5 + $0x48] sm:$0xff] }
 0x331   : > { %4760 = vmatprep.subr.bf16.mxu0 %v4759_v18 }
 0x334   : > { %4762 = vmatpush3.bf16.msra.mxu0 %v4759_v18  ;;  %v4823_v18 = vpack.c.bf16 %v3576_v52, %v3575_v14 }
 0x335   : > { %4270 = vmatprep.subr.msk.mxu0 %vm843_vm6, %v3533_v19 }
 0x338   : > { %4271 = vmatpush3.msk.msra.mxu0 %vm843_vm6, %v3533_v19 }
 0x339   : > { %4273 = vmatmul.mubr.msk.f32.vlgmr.msra.gmra.mrb[8].mxu0 %vm1664_vm11, %v5740_v34  ;;  %4871 = vmatprep.subr.bf16.mxu0 %v5120_v53 }
 0x33a   : > { %4418 = vmatprep.mubr.msk.f32.mxu0 %vm5121_vm13, %v5118_v56 }
 0x3f5   : > { %v4199_v24 = vpop.f32.mrb[12].mxu1 }
 0x3f6   : > { %v1820_v25 = vpop.f32.mrb[13].mxu1 }
 0x40c   : > { %v4274_v54 = vpop.f32.mrb[8].mxu0 }
 0x40d   : > { %v4958_v31 = vadd.f32 %v4274_v54, %v4199_v24  ;;  %v2117_v42 = vpop.f32.mrb[9].mxu0  ;;  %v3579_v24 = vld [vmem:[%s6266_s3 + $0x2b8] sm:$0xf]  ;;  %v3584_v54 = vld [vmem:[%s6266_s3 + $0x2c8] sm:$0xff] }
 0x40e   : > { %v4959_v43 = vadd.f32 %v2117_v42, %v1820_v25  ;;  %v3583_v25 = vld [vmem:[%s6266_s3 + $0x2c0] sm:$0xff]  ;;  %v3586_v42 = vld [vmem:[%s6266_s3 + $0x2d8] sm:$0xff] }
 0x410   : > { %v4764_v46 = vpack.c.bf16 %v4958_v31, %v4959_v43  ;;  %v3585_v31 = vld [vmem:[%s6266_s3 + $0x2d0] sm:$0xff]  ;;  %v4831_v43 = vpack.c.bf16 %v3584_v54, %v3583_v25  ;;  %v3618_v54 = vld [vmem:[%s6268_s5 + $0x58] sm:$0xff] }
 0x411   : > { %v3617_v25 = vld [vmem:[%s6268_s5 + $0x50] sm:$0xff] }
 0x412   : > { %4766 = vmatpush3.bf16.msk.msra.mxu1 %vm5792_vm15, %v4764_v46 }
 0x413   : > { %4767 = vmatprep.subr.bf16.mxu1 %v5120_v53 }
 0x415   : > { %4280 = vmatmul.mubr.msk.f32.vlgmr.msra.gmra.mrb[14].mxu1 %vm2128_vm0, %v5379_v57 }
 0x416   : > { %4770 = vmatpush3.bf16.msk.msra.mxu1 %vm5792_vm15, %v4764_v46  ;;  %4286 = vmatprep.mubr.msk.f32.mxu1 %vm5121_vm13, %v5118_v56  ;;  %v4835_v46 = vpack.c.bf16 %v3586_v42, %v3585_v31  ;;  %v4895_v42 = vpack.c.bf16 %v3618_v54, %v3617_v25  ;;  %v3659_v25 = vld [vmem:[%s6268_s5 + $0x188] sm:$0xff] }
 0x417   : > { %4772 = vmatprep.subr.bf16.mxu1 %v4771_v55 }
 0x419   : > { %4287 = vmatmul.mubr.msk.f32.vlgmr.msra.gmra.mrb[16].mxu1 %vm2128_vm0, %v5406_v13 }
 0x41a   : > { %4774 = vmatpush3.bf16.msra.mxu1 %v4771_v55  ;;  %4311 = vmatprep.mubr.msk.f32.mxu1 %vm1664_vm11, %v5668_v59  ;;  %v3561_v59 = vld [vmem:[%s6266_s3 + $0x258] sm:$0xff]  ;;  %v4839_v55 = vpack.c.bf16 %v3588_v48, %v3587_v47  ;;  %v3620_v47 = vld [vmem:[%s6268_s5 + $0x68] sm:$0xff] }
 0x41b   : > { %4776 = vmatprep.subr.bf16.mxu1 %v4775_v63  ;;  %v4787_v8 = vpack.c.bf16 %v3561_v59, %v3560_v7 }
 0x41e   : > { %4778 = vmatpush3.bf16.msra.mxu1 %v4775_v63  ;;  %v4843_v63 = vpack.c.bf16 %v3590_v62, %v3589_v61  ;;  %v3622_v61 = vld [vmem:[%s6268_s5 + $0x78] sm:$0xff] }
 0x41f   : > { %4780 = vmatprep.subr.bf16.mxu1 %v4779_v2 }
 0x422   : > { %4782 = vmatpush3.bf16.msra.mxu1 %v4779_v2  ;;  %v3597_v2 = vld [vmem:[%s6266_s3 + $0x318] sm:$0xff] }
 0x423   : > { %4784 = vmatprep.subr.bf16.mxu1 %v4783_v6  ;;  %v4851_v7 = vpack.c.bf16 %v3598_v4, %v3597_v2  ;;  %v3628_v4 = vld [vmem:[%s6268_s5 + $0xa0] sm:$0xff] }
 0x426   : > { %4786 = vmatpush3.bf16.msra.mxu1 %v4783_v6  ;;  %v3600_v6 = vld [vmem:[%s6266_s3 + $0x330] sm:$0xff] }
 0x427   : > { %4788 = vmatprep.subr.bf16.mxu1 %v4787_v8  ;;  %v4855_v59 = vpack.c.bf16 %v3600_v6, %v3599_v5  ;;  %v3629_v5 = vld [vmem:[%s6268_s5 + $0xa8] sm:$0xff] }
 0x428   : > { %v4910_v6 = vpack.c.bf16 %v3629_v5, %v3628_v4 }
 0x42a   : > { %4790 = vmatpush3.bf16.msra.mxu1 %v4787_v8  ;;  %v3601_v8 = vld [vmem:[%s6266_s3 + $0x338] sm:$0xff] }
 0x42b   : > { %4309 = vmatprep.subr.msk.mxu1 %vm843_vm6, %v3562_v9 }
 0x42e   : > { %4310 = vmatpush3.msk.msra.mxu1 %vm843_vm6, %v3562_v9  ;;  %v3602_v9 = vld [vmem:[%s6266_s3 + $0x340] sm:$0xff] }
 0x42f   : > { %4312 = vmatmul.mubr.msk.f32.vlgmr.msra.gmra.mrb[18].mxu1 %vm1664_vm11, %v5644_v38  ;;  %4792 = vmatprep.subr.bf16.mxu1 %v4791_v16  ;;  %v3549_v38 = vld [vmem:[%s6266_s3 + $0x1f8] sm:$0xff]  ;;  %v4859_v10 = vpack.c.bf16 %v3602_v9, %v3601_v8 }
 0x430   : > { %4794 = vmatpush3.bf16.msra.mxu1 %v4791_v16  ;;  %4336 = vmatprep.mubr.msk.f32.mxu1 %vm1664_vm11, %v5641_v37  ;;  %v3550_v37 = vld [vmem:[%s6266_s3 + $0x200] sm:$0xff]  ;;  %v3631_v8 = vld [vmem:[%s6268_s5 + $0xb8] sm:$0xff] }
 0x431   : > { %4796 = vmatprep.subr.bf16.mxu1 %v4795_v17  ;;  %v4807_v33 = vpack.c.bf16 %v3550_v37, %v3549_v38 }
 0x434   : > { %4798 = vmatpush3.bf16.msra.mxu1 %v4795_v17  ;;  %v3607_v17 = vld [vmem:[%s6266_s3 + $0x368] sm:$0xf] }
 0x435   : > { %4800 = vmatprep.subr.bf16.mxu1 %v4799_v22 }
 0x438   : > { %4802 = vmatpush3.bf16.msra.mxu1 %v4799_v22 }
 0x439   : > { %4804 = vmatprep.subr.bf16.mxu1 %v4803_v28 }
 0x43c   : > { %4806 = vmatpush3.bf16.msra.mxu1 %v4803_v28 }
 0x43d   : > { %4808 = vmatprep.subr.bf16.mxu1 %v4807_v33 }
 0x440   : > { %4810 = vmatpush3.bf16.msra.mxu1 %v4807_v33  ;;  %v2888_v33 = vld [vmem:[%s6268_s5] sm:$0xff] }
 0x441   : > { %4334 = vmatprep.subr.msk.mxu1 %vm843_vm6, %v3551_v35 }
 0x444   : > { %4335 = vmatpush3.msk.msra.mxu1 %vm843_vm6, %v3551_v35 }
 0x445   : > { %4337 = vmatmul.mubr.msk.f32.vlgmr.msra.gmra.mrb[18].mxu1 %vm1664_vm11, %v5639_v32  ;;  %4812 = vmatprep.subr.bf16.mxu1 %v4811_v50  ;;  %v3577_v32 = vld [vmem:[%s6266_s3 + $0x2a8] sm:$0xff] }
 0x446   : > { %4814 = vmatpush3.bf16.msra.mxu1 %v4811_v50  ;;  %4361 = vmatprep.mubr.msk.f32.mxu1 %vm1664_vm11, %v5671_v60  ;;  %v3578_v60 = vld [vmem:[%s6266_s3 + $0x2b0] sm:$0xff]  ;;  %v2895_v50 = vld [vmem:[%s6268_s5 + $0x38] sm:$0xff] }
 0x447   : > { %4816 = vmatprep.subr.bf16.mxu1 %v4815_v29  ;;  %v4827_v19 = vpack.c.bf16 %v3578_v60, %v3577_v32 }
 0x44a   : > { %4818 = vmatpush3.bf16.msra.mxu1 %v4815_v29 }
 0x44b   : > { %4820 = vmatprep.subr.bf16.mxu1 %v4819_v36 }
 0x44e   : > { %4822 = vmatpush3.bf16.msra.mxu1 %v4819_v36  ;;  %v4892_v36 = vpack.c.bf16 %v2897_v51, %v2896_v30  ;;  %v3652_v51 = vld [vmem:[%s6268_s5 + $0x150] sm:$0xff] }
 0x44f   : > { %4824 = vmatprep.subr.bf16.mxu1 %v4823_v18 }
 0x452   : > { %4826 = vmatpush3.bf16.msra.mxu1 %v4823_v18 }
 0x453   : > { %4828 = vmatprep.subr.bf16.mxu1 %v4827_v19 }
 0x456   : > { %4830 = vmatpush3.bf16.msra.mxu1 %v4827_v19  ;;  %v3615_v19 = vld [vmem:[%s6267_s4] ss:$0 sm:$0xff] }
 0x457   : > { %4359 = vmatprep.subr.msk.mxu1 %vm843_vm6, %v3579_v24 }
 0x45a   : > { %4360 = vmatpush3.msk.msra.mxu1 %vm843_vm6, %v3579_v24 }
 0x45b   : > { %4362 = vmatmul.mubr.msk.f32.vlgmr.msra.gmra.mrb[18].mxu1 %vm1664_vm11, %v5647_v49  ;;  %4832 = vmatprep.subr.bf16.mxu1 %v4831_v43  ;;  %v3591_v49 = vld [vmem:[%s6266_s3 + $0x300] sm:$0xff] }
 0x45c   : > { %4834 = vmatpush3.bf16.msra.mxu1 %v4831_v43  ;;  %4386 = vmatprep.mubr.msk.f32.mxu1 %vm1664_vm11, %v5694_v3  ;;  %v3592_v3 = vld [vmem:[%s6266_s3 + $0x308] sm:$0xff] }
 0x45d   : > { %4836 = vmatprep.subr.bf16.mxu1 %v4835_v46  ;;  %v4847_v0 = vpack.c.bf16 %v3592_v3, %v3591_v49  ;;  %v3624_v49 = vld [vmem:[%s6268_s5 + $0x88] sm:$0xff] }
 0x460   : > { %4838 = vmatpush3.bf16.msra.mxu1 %v4835_v46  ;;  %v3619_v46 = vld [vmem:[%s6268_s5 + $0x60] sm:$0xff] }
 0x461   : > { %4840 = vmatprep.subr.bf16.mxu1 %v4839_v55  ;;  %v4898_v48 = vpack.c.bf16 %v3620_v47, %v3619_v46 }
 0x464   : > { %4842 = vmatpush3.bf16.msra.mxu1 %v4839_v55  ;;  %v3621_v55 = vld [vmem:[%s6268_s5 + $0x70] sm:$0xff] }
 0x465   : > { %4844 = vmatprep.subr.bf16.mxu1 %v4843_v63  ;;  %v4901_v62 = vpack.c.bf16 %v3622_v61, %v3621_v55 }
 0x468   : > { %4846 = vmatpush3.bf16.msra.mxu1 %v4843_v63  ;;  %v3623_v63 = vld [vmem:[%s6268_s5 + $0x80] sm:$0xff] }
 0x469   : > { %4848 = vmatprep.subr.bf16.mxu1 %v4847_v0  ;;  %v4904_v3 = vpack.c.bf16 %v3624_v49, %v3623_v63 }
 0x46c   : > { %4850 = vmatpush3.bf16.msra.mxu1 %v4847_v0  ;;  %v3625_v0 = vld [vmem:[%s6268_s5 + $0x90] sm:$0xff] }
 0x46d   : > { %4384 = vmatprep.subr.msk.mxu1 %vm843_vm6, %v3593_v1 }
 0x470   : > { %4385 = vmatpush3.msk.msra.mxu1 %vm843_vm6, %v3593_v1  ;;  %v3626_v1 = vld [vmem:[%s6268_s5 + $0x98] sm:$0xff] }
 0x471   : > { %4387 = vmatmul.mubr.msk.f32.vlgmr.msra.gmra.mrb[18].mxu1 %vm1664_vm11, %v5665_v58  ;;  %4852 = vmatprep.subr.bf16.mxu1 %v4851_v7  ;;  %v3605_v58 = vld [vmem:[%s6266_s3 + $0x358] sm:$0xff]  ;;  %v4907_v2 = vpack.c.bf16 %v3626_v1, %v3625_v0 }
 0x472   : > { %4854 = vmatpush3.bf16.msra.mxu1 %v4851_v7  ;;  %4411 = vmatprep.mubr.msk.f32.mxu1 %vm1664_vm11, %v5756_v41  ;;  %v3606_v41 = vld [vmem:[%s6266_s3 + $0x360] sm:$0xff] }
 0x473   : > { %4856 = vmatprep.subr.bf16.mxu1 %v4855_v59  ;;  %v4867_v16 = vpack.c.bf16 %v3606_v41, %v3605_v58  ;;  %v3635_v58 = vld [vmem:[%s6268_s5 + $0xd8] sm:$0xff] }
 0x476   : > { %4858 = vmatpush3.bf16.msra.mxu1 %v4855_v59  ;;  %v3630_v59 = vld [vmem:[%s6268_s5 + $0xb0] sm:$0xff] }
 0x477   : > { %4860 = vmatprep.subr.bf16.mxu1 %v4859_v10  ;;  %v4913_v9 = vpack.c.bf16 %v3631_v8, %v3630_v59 }
 0x47a   : > { %4862 = vmatpush3.bf16.msra.mxu1 %v4859_v10  ;;  %v3632_v10 = vld [vmem:[%s6268_s5 + $0xc0] sm:$0xff] }
 0x47b   : > { %4864 = vmatprep.subr.bf16.mxu1 %v4863_v15  ;;  %v4916_v12 = vpack.c.bf16 %v3633_v11, %v3632_v10 }
 0x47e   : > { %4866 = vmatpush3.bf16.msra.mxu1 %v4863_v15  ;;  %v3634_v15 = vld [vmem:[%s6268_s5 + $0xd0] sm:$0xff] }
 0x47f   : > { %4868 = vmatprep.subr.bf16.mxu1 %v4867_v16  ;;  %v4919_v41 = vpack.c.bf16 %v3635_v58, %v3634_v15 }
 0x482   : > { %4870 = vmatpush3.bf16.msra.mxu1 %v4867_v16  ;;  %v3636_v16 = vld [vmem:[%s6268_s5 + $0xe0] sm:$0xff] }
 0x483   : > { %4409 = vmatprep.subr.msk.mxu1 %vm843_vm6, %v3607_v17 }
 0x486   : > { %4410 = vmatpush3.msk.msra.mxu1 %vm843_vm6, %v3607_v17  ;;  %v3637_v17 = vld [vmem:[%s6268_s5 + $0xe8] sm:$0xff] }
 0x487   : > { %4412 = vmatmul.mubr.msk.f32.vlgmr.msra.gmra.mrb[18].mxu1 %vm1664_vm11, %v5740_v34  ;;  %v2889_v34 = vld [vmem:[%s6268_s5 + $0x8] sm:$0xff] }
 0x488   : > { %v4880_v35 = vpack.c.bf16 %v2889_v34, %v2888_v33  ;;  %v3643_v33 = vld [vmem:[%s6268_s5 + $0x110] sm:$0xff]  ;;  %v3644_v34 = vld [vmem:[%s6268_s5 + $0x118] sm:$0xff] }
 0x4e8   : > { %v2201_v20 = vpop.f32.mrb[14].mxu1 }
 0x4e9   : > { %v4281_v21 = vpop.f32.mrb[15].mxu1 }
 0x4ea   : > { %v3639_v21 = vld [vmem:[%s6268_s5 + $0xf0] sm:$0xff] }
 0x4ec   : > { %v2273_v22 = vpop.f32.mrb[16].mxu1 }
 0x4ed   : > { %v2277_v26 = vmax.f32 %v2201_v20, %v2273_v22  ;;  %v4288_v27 = vpop.f32.mrb[17].mxu1  ;;  %v4922_v20 = vpack.c.bf16 %v3637_v17, %v3636_v16  ;;  %v3640_v22 = vld [vmem:[%s6268_s5 + $0xf8] sm:$0xff] }
 0x55a   : > { %v4413_v28 = vpop.f32.mrb[18].mxu1 }
 0x55b   : > { %v2723_v38 = vpop.f32.mrb[19].mxu1 }
 0x55c   : > { %v4872_v37 = vpack.c.bf16 %v4413_v28, %v2723_v38  ;;  %v3641_v28 = vld [vmem:[%s6268_s5 + $0x100] sm:$0xff]  ;;  %v3642_v38 = vld [vmem:[%s6268_s5 + $0x108] sm:$0xff] }
 0x55e   : > { %4874 = vmatpush3.bf16.msk.msra.mxu0 %vm5792_vm15, %v4872_v37 }
 0x55f   : > { %4875 = vmatprep.subr.bf16.mxu0 %v5120_v53 }
 0x561   : > { %4419 = vmatmul.mubr.msk.f32.vlgmr.msra.gmra.mrb[10].mxu0 %vm2128_vm0, %v5379_v57  ;;  %v4883_v57 = vpack.c.bf16 %v2891_v40, %v2890_v39  ;;  %v3645_v39 = vld [vmem:[%s6268_s5 + $0x120] sm:$0xff]  ;;  %v3646_v40 = vld [vmem:[%s6268_s5 + $0x128] sm:$0xff] }
 0x562   : > { %4878 = vmatpush3.bf16.msk.msra.mxu0 %vm5792_vm15, %v4872_v37  ;;  %4425 = vmatprep.mubr.msk.f32.mxu0 %vm5121_vm13, %v5118_v56  ;;  %v4928_v37 = vpack.c.bf16 %v3642_v38, %v3641_v28 }
 0x563   : > { %4879 = vmatprep.subr.bf16.mxu0 %v5120_v53 }
 0x565   : > { %4426 = vmatmul.mubr.msk.f32.vlgmr.msra.gmra.mrb[12].mxu0 %vm2128_vm0, %v5406_v13  ;;  %v2894_v13 = vld [vmem:[%s6268_s5 + $0x30] sm:$0xff] }
 0x566   : > { %4881 = vmatpush3.bf16.msra.mxu0 %v4880_v35  ;;  %4448 = vmatprep.mubr.msk.f32.mxu0 %vm5121_vm13, %v5118_v56  ;;  %v4889_v29 = vpack.c.bf16 %v2895_v50, %v2894_v13  ;;  %v4931_v35 = vpack.c.bf16 %v3644_v34, %v3643_v33  ;;  %v3650_v13 = vld [vmem:[%s6268_s5 + $0x140] sm:$0xff]  ;;  %v3651_v50 = vld [vmem:[%s6268_s5 + $0x148] sm:$0xff] }
 0x567   : > { %4882 = vmatprep.subr.bf16.mxu0 %v5120_v53 }
 0x56a   : > { %4884 = vmatpush3.bf16.msra.mxu0 %v4883_v57  ;;  %v4934_v57 = vpack.c.bf16 %v3646_v40, %v3645_v39 }
 0x56b   : > { %4885 = vmatprep.subr.bf16.mxu0 %v5120_v53 }
 0x56e   : > { %4887 = vmatpush3.bf16.msra.mxu0 %v4886_v44  ;;  %v4937_v44 = vpack.c.bf16 %v3648_v23, %v3647_v45 }
 0x56f   : > { %4888 = vmatprep.subr.bf16.mxu0 %v5120_v53 }
 0x572   : > { %4890 = vmatpush3.bf16.msra.mxu0 %v4889_v29  ;;  %v4940_v29 = vpack.c.bf16 %v3651_v50, %v3650_v13 }
 0x573   : > { %4891 = vmatprep.subr.bf16.mxu0 %v5120_v53 }
 0x576   : > { %4893 = vmatpush3.bf16.msra.mxu0 %v4892_v36  ;;  %v3653_v36 = vld [vmem:[%s6268_s5 + $0x158] sm:$0xff] }
 0x577   : > { %4894 = vmatprep.subr.bf16.mxu0 %v5120_v53 }
 0x634   : > { %v2803_v14 = vpop.f32.mrb[10].mxu0 }
 0x635   : > { %v4420_v52 = vpop.f32.mrb[11].mxu0 }
 0x636   : > { %v3654_v52 = vld [vmem:[%s6268_s5 + $0x160] sm:$0xff] }
 0x638   : > { %v2873_v18 = vpop.f32.mrb[12].mxu0 }
 0x639   : > { %v2877_v32 = vmax.f32 %v2803_v14, %v2873_v18  ;;  %v4427_v60 = vpop.f32.mrb[13].mxu0  ;;  %v4943_v14 = vpack.c.bf16 %v3653_v36, %v3652_v51  ;;  %v3655_v18 = vld [vmem:[%s6268_s5 + $0x168] sm:$0xff] }
 0x63a   : > { %v3657_v60 = vld [vmem:[%s6268_s5 + $0x178] sm:$0xff] }
 0x63b   : > { %v2878_v24 = vmax.f32 %v2277_v26, %v2877_v32  ;;  %v4925_v26 = vpack.c.bf16 %v3640_v22, %v3639_v21  ;;  %v4946_v32 = vpack.c.bf16 %v3655_v18, %v3654_v52 }
 0x63d   : > { %v2885_v31 = vadd.f32 %v3615_v19, %v2878_v24  ;;  %v3658_v24 = vld [vmem:[%s6268_s5 + $0x180] sm:$0xff] }
 0x63e   : > { %v4952_v54 = vpack.c.bf16 %v3659_v25, %v3658_v24 }
 0x63f   : > { %v6060_v43 = vmax.f32 %v2885_v31, 0.0 }
 0x641   : > { %4449 = vmatmul.mubr.msk.f32.vlgmr.msra.gmra.mrb[14].mxu0 %vm2898_vm1, %v6060_v43  ;;  %v2984_v7 = vrot.slane %v6060_v43, 1  ;;  %v3069_v27 = vrot.slane %v6060_v43, 2  ;;  %v3154_v30 = vrot.slane %v6060_v43, 3  ;;  %v3239_v31 = vrot.slane %v6060_v43, 4 }
 0x642   : > { %4896 = vmatpush3.bf16.msra.mxu0 %v4895_v42  ;;  %4471 = vmatprep.mubr.msk.f32.mxu0 %vm5121_vm13, %v5118_v56  ;;  %v2887_v42 = vld [vmem:[%s6269_s6] sm:$0x1] }
 0x643   : > { %4897 = vmatprep.subr.bf16.mxu0 %v5120_v53 }
 0x646   : > { %4899 = vmatpush3.bf16.msra.mxu0 %v4898_v48 }
 0x647   : > { %4900 = vmatprep.subr.bf16.mxu0 %v5120_v53 }
 0x64a   : > { %4902 = vmatpush3.bf16.msra.mxu0 %v4901_v62 }
 0x64b   : > { %4903 = vmatprep.subr.bf16.mxu0 %v5120_v53 }
 0x64e   : > { %4905 = vmatpush3.bf16.msra.mxu0 %v4904_v3 }
 0x64f   : > { %4906 = vmatprep.subr.bf16.mxu0 %v5120_v53 }
 0x652   : > { %4908 = vmatpush3.bf16.msra.mxu0 %v4907_v2 }
 0x653   : > { %4909 = vmatprep.subr.bf16.mxu0 %v5120_v53 }
 0x655   : > { %4472 = vmatmul.mubr.msk.f32.vlgmr.msra.gmra.mrb[14].mxu0 %vm2898_vm1, %v2984_v7 }
 0x656   : > { %4911 = vmatpush3.bf16.msra.mxu0 %v4910_v6  ;;  %4494 = vmatprep.mubr.msk.f32.mxu0 %vm5121_vm13, %v5118_v56 }
 0x657   : > { %4912 = vmatprep.subr.bf16.mxu0 %v5120_v53 }
 0x65a   : > { %4914 = vmatpush3.bf16.msra.mxu0 %v4913_v9 }
 0x65b   : > { %4915 = vmatprep.subr.bf16.mxu0 %v5120_v53 }
 0x65e   : > { %4917 = vmatpush3.bf16.msra.mxu0 %v4916_v12 }
 0x65f   : > { %4918 = vmatprep.subr.bf16.mxu0 %v5120_v53 }
 0x662   : > { %4920 = vmatpush3.bf16.msra.mxu0 %v4919_v41 }
 0x663   : > { %4921 = vmatprep.subr.bf16.mxu0 %v5120_v53 }
 0x666   : > { %4923 = vmatpush3.bf16.msra.mxu0 %v4922_v20 }
 0x667   : > { %4924 = vmatprep.subr.bf16.mxu0 %v5120_v53 }
 0x669   : > { %4495 = vmatmul.mubr.msk.f32.vlgmr.msra.gmra.mrb[14].mxu0 %vm2898_vm1, %v3069_v27 }
 0x66a   : > { %4926 = vmatpush3.bf16.msra.mxu0 %v4925_v26  ;;  %4517 = vmatprep.mubr.msk.f32.mxu0 %vm5121_vm13, %v5118_v56 }
 0x66b   : > { %4927 = vmatprep.subr.bf16.mxu0 %v5120_v53 }
 0x66e   : > { %4929 = vmatpush3.bf16.msra.mxu0 %v4928_v37 }
 0x66f   : > { %4930 = vmatprep.subr.bf16.mxu0 %v5120_v53 }
 0x672   : > { %4932 = vmatpush3.bf16.msra.mxu0 %v4931_v35 }
 0x673   : > { %4933 = vmatprep.subr.bf16.mxu0 %v5120_v53 }
 0x676   : > { %4935 = vmatpush3.bf16.msra.mxu0 %v4934_v57 }
 0x677   : > { %4936 = vmatprep.subr.bf16.mxu0 %v5120_v53 }
 0x67a   : > { %4938 = vmatpush3.bf16.msra.mxu0 %v4937_v44 }
 0x67b   : > { %4939 = vmatprep.subr.bf16.mxu0 %v5120_v53 }
 0x67d   : > { %4518 = vmatmul.mubr.msk.f32.vlgmr.msra.gmra.mrb[14].mxu0 %vm2898_vm1, %v3154_v30 }
 0x67e   : > { %4941 = vmatpush3.bf16.msra.mxu0 %v4940_v29  ;;  %4540 = vmatprep.mubr.msk.f32.mxu0 %vm5121_vm13, %v5118_v56  ;;  %v3656_v56 = vld [vmem:[%s6268_s5 + $0x170] sm:$0xff] }
 0x67f   : > { %4942 = vmatprep.subr.bf16.mxu0 %v5120_v53  ;;  %v4949_v19 = vpack.c.bf16 %v3657_v60, %v3656_v56 }
 0x682   : > { %4944 = vmatpush3.bf16.msra.mxu0 %v4943_v14 }
 0x683   : > { %4945 = vmatprep.subr.bf16.mxu0 %v5120_v53 }
 0x686   : > { %4947 = vmatpush3.bf16.msra.mxu0 %v4946_v32 }
 0x687   : > { %4948 = vmatprep.subr.bf16.mxu0 %v5120_v53 }
 0x68a   : > { %4950 = vmatpush3.bf16.msra.mxu0 %v4949_v19 }
 0x68b   : > { %4951 = vmatprep.subr.bf16.mxu0 %v5120_v53 }
 0x68e   : > { %4953 = vmatpush3.bf16.msra.mxu0 %v4952_v54 }
 0x691   : > { %4541 = vmatmul.mubr.msk.f32.vlgmr.msra.gmra.mrb[14].mxu0 %vm2898_vm1, %v3239_v31 }
 0x764   : > { %v3308_v46 = vpop.f32.mrb[14].mxu0 }
 0x765   : > { %v4960_v47 = vadd.f32 %v3308_v46, %v2887_v42  ;;  %v4542_v48 = vpop.f32.mrb[15].mxu0 }
 0x767   : > { %3314 = vst.msk [vmem:[%s270_s21] sm:$0x1] %vm3313_vm2, %v4960_v47 }
 0x768   : > { %5067 = shalt.err (!%p5064_p3)
}
 0x769   : > { %s5068_s16 = scalar_lea.hbm %s6221_s8, 16  ;;  %s5072_s18 = scalar_lea.hbm %s6270_s7, 32 }
 0x76a   : > { %p5069_p4 = scmp.ne.s32.totalorder %s6221_s8, %s5068_s16  ;;  %p5073_p9 = scmp.lt.u32.totalorder %s6221_s8, %s6270_s7 }
 0x76b   : > { %p5074_p10 = scmp.lt.u32.totalorder %s5072_s18, %s5068_s16  ;;  %p5076_p12 = scmp.lt.u32.totalorder %s5068_s16, %s6221_s8 }
 0x76c   : > { %p5070_p7 = pnand %p5069_p4, %p5201_p5 }
 0x76d   : > { %p5075_p11 = por %p5074_p10, %p5073_p9 }
 0x76e   : > { %p5071_p8 = pneg %p5070_p7 }
 0x76f   : > { %p5077_p13 = por %p5076_p12, %p5075_p11 }
 0x771   : > { %p5078_p0 = pnand %p5077_p13, %p5071_p8 }
 0x773   : > { %5081 = shalt.err (!%p5078_p0)
}
 0x774   : > { %5011 = dma.vmem_to_hbm [thread:$0]  (%p5201_p5), %s6223_s22, 16, %s6221_s8, %s3316_s9  }
 0x775 PF: > { %p5017_p1 = scmp.ge.s32.totalorder %s5116_s27, 2  ;;  %s3340_s23 = sand.u32 1, %s5104_s24  }
 0x776   : > { %s3341_s29 = scalar_lea.sflag [#allocation3], %s3340_s23 }
 0x777   : > { %p5014_p2 = pnand %p5017_p1, %p5205_p6 }
 0x779   : > { %5099 = dma.done.wait (!%p5014_p2), %s3341_s29, 16  }
 0x77a   : > { %5101 = vsyncadd (!%p5014_p2), %s3341_s29, 4294967280  ;;  %p17_p3 = scmp.ge.s32.totalorder %s5188_s30, 4   ;;  %s6279_s24 = smov %s5108_s25 }
 0x77b   : > { %s6280_s25 = smov %s5112_s26  ;;  %s6281_s26 = smov %s5199_s10 }
 0x77c   : > { %s6282_s27 = smov %s5188_s30  ;;  %19 = sbr.rel (!%p17_p3) target bundleno = 3 (0x3), region = 105 }
 0x783   :  { %3345 = vsyncpa [#allocation3], 1 }
 0x784   :  { %3347 = vsyncpa [#allocation3 + $0x1], 1 }

</bundles_post_ra>
